<compile_context>
chip_gen: v7x
topology: tpu7x:2x2x1
jax: 0.10.0
libtpu: 0.0.40
codegen_flags: <defaults>
</compile_context>

<pallas_src>
import functools

import jax
import jax.numpy as jnp
from jax.experimental import pallas as pl
from jax.experimental.pallas import tpu as pltpu


def _gbn_kernel(x_ref, w_ref, b_ref, o_ref, *, eps: float, inv_n: float, inv_nm1: float):
    # x_ref: (1, g_tile, cpg, HW)   w_ref/b_ref: (1, g_tile, cpg, 1)
    x = x_ref[...].astype(jnp.float32)

    # One-pass per-group statistics (reduce over channel + spatial dims).
    s = jnp.sum(jnp.sum(x, axis=-1, keepdims=True), axis=-2, keepdims=True)
    ss = jnp.sum(jnp.sum(x * x, axis=-1, keepdims=True), axis=-2, keepdims=True)
    mean = s * inv_n                                  # (1, g_tile, 1, 1)
    # Unbiased variance (divide by n-1) -> matches torch.std default.
    var = (ss - s * mean) * inv_nm1
    std = jnp.sqrt(jnp.maximum(var, 0.0))
    denom = std + jnp.float32(eps)                    # eps added to std (module semantics)

    # EUP reciprocal (near-free slot) + one Newton step to recover full f32 accuracy.
    inv = pl.reciprocal(denom, approx=True)
    inv = inv * (2.0 - denom * inv)

    # Fold normalization into per-channel scale/shift (computed once per block).
    w = w_ref[...].astype(jnp.float32)                # (1, g_tile, cpg, 1)
    b = b_ref[...].astype(jnp.float32)
    scale = w * inv
    shift = b - mean * scale

    # Per-element work: one mul + one add.
    o_ref[...] = (x * scale + shift).astype(o_ref.dtype)


def group_batchnorm_2d(x, weight, bias, group_num: int = 16, eps: float = 1e-10,
                       target_block_bytes: int = 4 * 1024 * 1024):
    """x: (N, C, H, W); weight/bias: (C, 1, 1) like the PyTorch module."""
    N, C, H, W = x.shape
    assert C >= group_num and C % group_num == 0
    cpg = C // group_num
    HW = H * W
    n = cpg * HW
    assert n > 1, "a group must contain more than one element (unbiased std uses n-1)"

    # Lane-dense layout: spatial dim on the 128-lane axis. Free reshape for NCHW.
    x4 = x.reshape(N, group_num, cpg, HW)
    w4 = weight.reshape(1, group_num, cpg, 1)
    b4 = bias.reshape(1, group_num, cpg, 1)

    # Merge groups per grid step: fat enough to amortize per-step overhead, small
    # enough that double-buffered in+out slabs fit VMEM comfortably on v7x.
    bytes_per_group = cpg * HW * x.dtype.itemsize
    g_tile = 1
    for cand in range(1, group_num + 1):
        if group_num % cand == 0 and cand * bytes_per_group <= target_block_bytes:
            g_tile = cand
    # TODO(synk): if a single group slab exceeds the VMEM budget (very large H*W on
    # v7x), a two-pass sum/sumsq scheme over a spatial grid axis would be required.

    kernel = functools.partial(
        _gbn_kernel, eps=float(eps), inv_n=1.0 / n, inv_nm1=1.0 / (n - 1)
    )

    out4 = pl.pallas_call(
        kernel,
        out_shape=jax.ShapeDtypeStruct((N, group_num, cpg, HW), x.dtype),
        grid_spec=pltpu.PrefetchScalarGridSpec(
            num_scalar_prefetch=0,
            grid=(N, group_num // g_tile),
            in_specs=[
                pl.BlockSpec((1, g_tile, cpg, HW), lambda nb, gb: (nb, gb, 0, 0)),
                pl.BlockSpec((1, g_tile, cpg, 1), lambda nb, gb: (0, gb, 0, 0)),
                pl.BlockSpec((1, g_tile, cpg, 1), lambda nb, gb: (0, gb, 0, 0)),
            ],
            out_specs=pl.BlockSpec((1, g_tile, cpg, HW), lambda nb, gb: (nb, gb, 0, 0)),
        ),
        compiler_params=pltpu.CompilerParams(
            dimension_semantics=("parallel", "parallel"),
            vmem_limit_bytes=32 * 1024 * 1024,
        ),
    )(x4, w4, b4)

    return out4.reshape(N, C, H, W)


def _reference(x, weight, bias, group_num, eps):
    N, C, H, W = x.shape
    xg = x.reshape(N, group_num, -1).astype(jnp.float32)
    mean = xg.mean(axis=2, keepdims=True)
    std = jnp.sqrt(
        jnp.sum((xg - mean) ** 2, axis=2, keepdims=True) / (xg.shape[2] - 1)
    )
    xn = ((xg - mean) / (std + eps)).reshape(N, C, H, W)
    return xn * weight + bias


if __name__ == "__main__":
    key = jax.random.PRNGKey(0)
    k_x, k_w = jax.random.split(key)

    N, C, H, W = 2, 32, 16, 16
    group_num = 16
    eps = 1e-10

    x = jax.random.normal(k_x, (N, C, H, W), dtype=jnp.float32)
    # module __init__: weight = randn(c_num, 1, 1), bias = zeros(c_num, 1, 1)
    weight = jax.random.normal(k_w, (C, 1, 1), dtype=jnp.float32)
    bias = jnp.zeros((C, 1, 1), dtype=jnp.float32)

    out = group_batchnorm_2d(x, weight, bias, group_num=group_num, eps=eps)
    out = jax.block_until_ready(out)

    ref = _reference(x, weight, bias, group_num, eps)
    assert out.shape == (N, C, H, W)
    assert jnp.allclose(out, ref, atol=1e-3, rtol=1e-3)

    print("KERNEL_OK")
</pallas_src>

<mosaic_0001>
module attributes {stable_mosaic.version = 11 : i64} {
  func.func @_gbn_kernel(%arg0: i32, %arg1: i32, %arg2: memref<1x16x2x256xf32, #tpu.memory_space<vmem>>, %arg3: memref<1x16x2x1xf32, #tpu.memory_space<vmem>>, %arg4: memref<1x16x2x1xf32, #tpu.memory_space<vmem>>, %arg5: memref<1x16x2x256xf32, #tpu.memory_space<vmem>>) attributes {dimension_semantics = [#tpu.dimension_semantics<parallel>, #tpu.dimension_semantics<parallel>], iteration_bounds = array<i64: 2, 1>, scalar_prefetch = 0 : i64, scratch_operands = 0 : i64, tpu.core_type = #tpu.core_type<tc>, window_params = [{transform_indices = @transform_0, window_bounds = array<i64: 1, 16, 2, 256>}, {transform_indices = @transform_1, window_bounds = array<i64: 1, 16, 2, 1>}, {transform_indices = @transform_2, window_bounds = array<i64: 1, 16, 2, 1>}, {transform_indices = @transform_3, window_bounds = array<i64: 1, 16, 2, 256>}]} {
    %c0 = arith.constant 0 : index
    %c0_0 = arith.constant 0 : index
    %c0_1 = arith.constant 0 : index
    %c0_2 = arith.constant 0 : index
    %0 = vector.load %arg2[%c0, %c0_0, %c0_1, %c0_2] : memref<1x16x2x256xf32, #tpu.memory_space<vmem>>, vector<1x16x2x256xf32>
    %cst = arith.constant dense<0.000000e+00> : vector<1x16x2xf32>
    %1 = vector.multi_reduction <add>, %0, %cst [3] : vector<1x16x2x256xf32> to vector<1x16x2xf32>
    %2 = vector.shape_cast %1 : vector<1x16x2xf32> to vector<1x16x2x1xf32>
    %cst_3 = arith.constant dense<0.000000e+00> : vector<1x16x1xf32>
    %3 = vector.multi_reduction <add>, %2, %cst_3 [2] : vector<1x16x2x1xf32> to vector<1x16x1xf32>
    %4 = vector.shape_cast %3 : vector<1x16x1xf32> to vector<1x16x1x1xf32>
    %5 = arith.mulf %0, %0 : vector<1x16x2x256xf32>
    %cst_4 = arith.constant dense<0.000000e+00> : vector<1x16x2xf32>
    %6 = vector.multi_reduction <add>, %5, %cst_4 [3] : vector<1x16x2x256xf32> to vector<1x16x2xf32>
    %7 = vector.shape_cast %6 : vector<1x16x2xf32> to vector<1x16x2x1xf32>
    %cst_5 = arith.constant dense<0.000000e+00> : vector<1x16x1xf32>
    %8 = vector.multi_reduction <add>, %7, %cst_5 [2] : vector<1x16x2x1xf32> to vector<1x16x1xf32>
    %9 = vector.shape_cast %8 : vector<1x16x1xf32> to vector<1x16x1x1xf32>
    %cst_6 = arith.constant 0.001953125 : f32
    %10 = vector.broadcast %cst_6 : f32 to vector<1x16x1x1xf32>
    %11 = arith.mulf %4, %10 : vector<1x16x1x1xf32>
    %12 = arith.mulf %4, %11 : vector<1x16x1x1xf32>
    %13 = arith.subf %9, %12 : vector<1x16x1x1xf32>
    %cst_7 = arith.constant 0.00195694715 : f32
    %14 = vector.broadcast %cst_7 : f32 to vector<1x16x1x1xf32>
    %15 = arith.mulf %13, %14 : vector<1x16x1x1xf32>
    %cst_8 = arith.constant 0.000000e+00 : f32
    %16 = vector.broadcast %cst_8 : f32 to vector<1x16x1x1xf32>
    %17 = arith.maximumf %15, %16 : vector<1x16x1x1xf32>
    %18 = math.sqrt %17 : vector<1x16x1x1xf32>
    %cst_9 = arith.constant 1.000000e-10 : f32
    %19 = vector.broadcast %cst_9 : f32 to vector<1x16x1x1xf32>
    %20 = arith.addf %18, %19 : vector<1x16x1x1xf32>
    %21 = tpu.reciprocal %20 {approx = true} : vector<1x16x1x1xf32> -> vector<1x16x1x1xf32>
    %22 = arith.mulf %20, %21 : vector<1x16x1x1xf32>
    %cst_10 = arith.constant 2.000000e+00 : f32
    %23 = vector.broadcast %cst_10 : f32 to vector<1x16x1x1xf32>
    %24 = arith.subf %23, %22 : vector<1x16x1x1xf32>
    %25 = arith.mulf %21, %24 : vector<1x16x1x1xf32>
    %c0_11 = arith.constant 0 : index
    %c0_12 = arith.constant 0 : index
    %c0_13 = arith.constant 0 : index
    %c0_14 = arith.constant 0 : index
    %26 = vector.load %arg3[%c0_11, %c0_12, %c0_13, %c0_14] : memref<1x16x2x1xf32, #tpu.memory_space<vmem>>, vector<1x16x2x1xf32>
    %c0_15 = arith.constant 0 : index
    %c0_16 = arith.constant 0 : index
    %c0_17 = arith.constant 0 : index
    %c0_18 = arith.constant 0 : index
    %27 = vector.load %arg4[%c0_15, %c0_16, %c0_17, %c0_18] : memref<1x16x2x1xf32, #tpu.memory_space<vmem>>, vector<1x16x2x1xf32>
    %28 = vector.broadcast %25 : vector<1x16x1x1xf32> to vector<1x16x2x1xf32>
    %29 = arith.mulf %26, %28 : vector<1x16x2x1xf32>
    %30 = vector.broadcast %11 : vector<1x16x1x1xf32> to vector<1x16x2x1xf32>
    %31 = arith.mulf %30, %29 : vector<1x16x2x1xf32>
    %32 = arith.subf %27, %31 : vector<1x16x2x1xf32>
    %33 = vector.broadcast %29 : vector<1x16x2x1xf32> to vector<1x16x2x256xf32>
    %34 = arith.mulf %0, %33 : vector<1x16x2x256xf32>
    %35 = vector.broadcast %32 : vector<1x16x2x1xf32> to vector<1x16x2x256xf32>
    %36 = arith.addf %34, %35 : vector<1x16x2x256xf32>
    %c0_19 = arith.constant 0 : index
    %c0_20 = arith.constant 0 : index
    %c0_21 = arith.constant 0 : index
    %c0_22 = arith.constant 0 : index
    %37 = vector.load %arg5[%c0_19, %c0_20, %c0_21, %c0_22] : memref<1x16x2x256xf32, #tpu.memory_space<vmem>>, vector<1x16x2x256xf32>
    tpu.vector_store %arg5[%c0_19, %c0_20, %c0_21, %c0_22], %36 {strides = array<i32>} : memref<1x16x2x256xf32, #tpu.memory_space<vmem>>, vector<1x16x2x256xf32>,
    return
  }
  func.func @transform_0(%arg0: i32, %arg1: i32) -> (i32, i32, i32, i32) {
    %c0_i32 = arith.constant 0 : i32
    %c0_i32_0 = arith.constant 0 : i32
    %c0_i32_1 = arith.constant 0 : i32
    return %arg0, %arg1, %c0_i32, %c0_i32_0 : i32, i32, i32, i32
  }
  func.func @transform_1(%arg0: i32, %arg1: i32) -> (i32, i32, i32, i32) {
    %c0_i32 = arith.constant 0 : i32
    %c0_i32_0 = arith.constant 0 : i32
    %c0_i32_1 = arith.constant 0 : i32
    %c0_i32_2 = arith.constant 0 : i32
    return %c0_i32, %arg1, %c0_i32_0, %c0_i32_1 : i32, i32, i32, i32
  }
  func.func @transform_2(%arg0: i32, %arg1: i32) -> (i32, i32, i32, i32) {
    %c0_i32 = arith.constant 0 : i32
    %c0_i32_0 = arith.constant 0 : i32
    %c0_i32_1 = arith.constant 0 : i32
    %c0_i32_2 = arith.constant 0 : i32
    return %c0_i32, %arg1, %c0_i32_0, %c0_i32_1 : i32, i32, i32, i32
  }
  func.func @transform_3(%arg0: i32, %arg1: i32) -> (i32, i32, i32, i32) {
    %c0_i32 = arith.constant 0 : i32
    %c0_i32_0 = arith.constant 0 : i32
    %c0_i32_1 = arith.constant 0 : i32
    return %arg0, %arg1, %c0_i32, %c0_i32_0 : i32, i32, i32, i32
  }
}

</mosaic_0001>

<bundles_post_ra>
// kernel: tpu_custom_call.1
= control target key start
LH: loop header
LB: loop body
LE: loop exit
PB: predicated region body
PF: predicated region fallthrough
CT: control target
= control target key end

     0   :  { %8 = vsyncpa [#allocation3], 0  ;;  %s3211_s0 = inlined_call_operand.hbm [shape: f32[2,16,2,256], index: 0, kind: input, shape index: {}]   ;;  %s3212_s1 = inlined_call_operand.vmem [shape: f32[1,16,2,1], index: 1, kind: input, shape index: {}]   ;;  %s3213_s2 = inlined_call_operand.vmem [shape: f32[1,16,2,1], index: 2, kind: input, shape index: {}]   ;;  %s3214_s3 = inlined_call_operand.hbm [shape: f32[2,16,2,256], index: 3, kind: output, shape index: {}]  }
   0x1   :  { %10 = vsyncpa [#allocation3 + $0x1], 0 }
   0x2   :  { %11 = vsyncpa [#allocation4], 0 }
   0x3   :  { %13 = vsyncpa [#allocation4 + $0x1], 0  ;;  %s2254_s12 = smov 0   ;;  %s2256_s13 = smov 0  }
   0x4   :  { %s2258_s14 = smov 0   ;;  %s2260_s15 = smov 0  }
   0x5   :  { %s2262_s16 = smov 0   ;;  %s2264_s17 = smov 0  }
   0x6 LB: > { %s1941_s18 = sadd.s32 4294967295, %s2223_s17   ;;  %s1942_s19 = sadd.s32 4294967294, %s2223_s17   ;;  %s2223_s17 = sphi %s2264_s17, %s19_s17   ;;  %s2219_s16 = sphi %s2262_s16, %s3229_s16   ;;  %s2215_s15 = sphi %s2260_s15, %s3228_s15   ;;  %s2211_s14 = sphi %s2258_s14, %s3227_s14   ;;  %s2207_s13 = sphi %s2256_s13, %s3226_s13   ;;  %s2203_s12 = sphi %s2254_s12, %s3225_s12  }
   0x7   : > { %s31_s20 = sadd.s32 1, %s2219_s16  ;;  %s40_s21 = sadd.s32 1, %s2211_s14 }
   0x8   : > { %p33_p0 = scmp.ge.s32.totalorder %s31_s20, 2  ;;  %p47_p1 = scmp.ne.s32.totalorder %s2211_s14, %s2207_s13 }
   0x9   : > { %p48_p2 = scmp.eq.s32.totalorder %s2223_s17, 0  ;;  %p53_p3 = scmp.ne.s32.totalorder %s2207_s13, %s2203_s12 }
   0xa   : > { %s3231_s20 = smov (%p33_p0, %s31_s20), 0  ;;  %p54_p5 = scmp.eq.s32.totalorder %s1941_s18, 0 }
   0xb   : > { %p2295_p4 = por %p48_p2, %p47_p1  ;;  %s35_s23 = ssub.s32 %s2219_s16, %s3231_s20 }
   0xc   : > { %p131_p6 = scmp.eq.s32.totalorder %s1941_s18, 1  ;;  %p38_p7 = scmp.eq.s32.totalorder %s35_s23, 0 }
   0xd   : > { %p2301_p8 = por %p54_p5, %p53_p3  ;;  %p137_p10 = scmp.eq.s32.totalorder %s1942_s19, 1 }
   0xe   : > { %p2305_p9 = por %p131_p6, %p47_p1  ;;  %p1972_p13 = scmp.lt.s32.totalorder %s2223_s17, 2 }
   0xf   : > { %s2310_s26 = scalar_select %p38_p7, %s2211_s14, %s40_s21  }
  0x10   : > { %s3218_s25 = scalar_select %p2305_p9, 1, 0 }
  0x11   : > { %p2312_p11 = por %p137_p10, %p53_p3  ;;  %s175_s28 = sand.u32 1, %s2211_s14  }
  0x12   : > { %s1947_s29 = sshll.u32 %s175_s28, 6  ;;  %s1958_s30 = sshll.u32 %s2219_s16, 10 }
  0x13   : > { %s3219_s27 = scalar_select %p2312_p11, 1, 0 }
  0x14   : > { %s2323_s6 = scalar_lea.hbm %s3211_s0, %s1958_s30  ;;  %s179_s7 = scalar_lea.vmem [#allocation2], %s1947_s29 }
  0x15   : > { %s189_s8 = sshll.u32 %s179_s7, 4  ;;  %p2329_p0 = pnand %p1972_p13, %p2295_p4  ;;  %s2325_s8 = int_to_ptr.vmem [resolvable:$true] %s189_s8 }
  0x16   : > { %s2334_s10 = scalar_lea.sflag [#allocation3], %s175_s28  ;;  %s2111_s11 = scalar_lea.hbm %s2323_s6, 1024 }
  0x17   : > { %p2112_p2 = scmp.ne.s32.totalorder %s2323_s6, %s2111_s11  ;;  %p2113_p3 = pneg %p2329_p0 }
  0x18   : > { %s2116_s21 = scalar_lea.hbm %s3211_s0, 2048  ;;  %p2117_p4 = scmp.lt.u32.totalorder %s2323_s6, %s3211_s0 }
  0x19   : > { %p2114_p5 = pnand %p2113_p3, %p2112_p2  ;;  %p2118_p7 = scmp.lt.u32.totalorder %s2116_s21, %s2111_s11 }
  0x1a   : > { %p2120_p13 = scmp.lt.u32.totalorder %s2111_s11, %s2323_s6 }
  0x1b   : > { %p2115_p6 = pneg %p2114_p5  ;;  %p2119_p10 = por %p2118_p7, %p2117_p4 }
  0x1d   : > { %p2121_p12 = por %p2120_p13, %p2119_p10 }
  0x1f   : > { %p2122_p1 = pnand %p2121_p12, %p2115_p6 }
  0x21   : > { %2125 = shalt.err (!%p2122_p1)
}
  0x22   : > { %s2126_s28 = scalar_lea.vmem %s2325_s8, 1024  ;;  %s2225_s29 = smov [#allocation2]  }
  0x23   : > { %p2127_p2 = scmp.ne.s32.totalorder %s2325_s8, %s2126_s28  ;;  %s2131_s30 = sshll.u32 %s2225_s29, 4  ;;  %s2132_s30 = int_to_ptr.vmem [resolvable:$false] %s2131_s30 }
  0x24   : > { %s2133_s4 = scalar_lea.vmem %s2132_s30, 2048  ;;  %p2134_p9 = scmp.lt.s32.totalorder %s2325_s8, %s2132_s30 }
  0x25   : > { %p2129_p5 = pnand %p2127_p2, %p2113_p3  ;;  %p2135_p4 = scmp.lt.s32.totalorder %s2133_s4, %s2126_s28 }
  0x27   : > { %p2130_p11 = pneg %p2129_p5  ;;  %p2136_p7 = por %p2135_p4, %p2134_p9 }
  0x29   : > { %p2137_p10 = pnand %p2136_p7, %p2130_p11 }
  0x2b   : > { %2140 = shalt.err (!%p2137_p10)
}
  0x2c   : > { %s2226_s5 = smov 64   ;;  %s2227_s7 = smov 4  }
  0x2d   : > { %1967 = dma.hbm_to_vmem [thread:$0]  (!%p2329_p0), %s2323_s6, 1024, %s2325_s8, %s2334_s10, %s2226_s5, %s2226_s5, %s2227_s7  }
  0x2e   : > { %p197_p12 = scmp.lt.s32.totalorder %s2223_s17, 3  ;;  %p3221_p1 = scmp.ge.s32.totalorder %s2223_s17, 1 }
  0x30   : > { %p198_p3 = pnand %p3221_p1, %p197_p12 }
  0x31   : > { %s2366_s11 = sand.u32 (!%p198_p3), 1, %s2207_s13  }
  0x32   : > { %201 = sbr.rel (%p198_p3) target bundleno = 544 (0x220), region = 32  ;;  %s1951_s18 = sshll.u32 (!%p198_p3), %s2366_s11, 6 }
  0x33   : > { %s204_s19 = scalar_lea.sflag (!%p198_p3), [#allocation3], %s2366_s11  ;;  %s2372_s21 = scalar_lea.vmem (!%p198_p3), [#allocation2], %s1951_s18 }
  0x39   : > { %2194 = dma.done.wait (%p2301_p8), %s204_s19, 1024  }
  0x3a   : > { %2196 = vsyncadd (%p2301_p8), %s204_s19, 4294966272  ;;  %v289_v0 = vlaneseq  ;;  %v2228_v1 = vmov 1983009808   ;;  %vm446_vm0 = vcmask 1041408   ;;  %v2384_v6 = vld [vmem:[%s2372_s21 + $0x8] sm:$0xf] }
  0x3b   : > { %v287_v2 = vunpack.c.l.s4 %v2228_v1  ;;  %v2387_v7 = vld [vmem:[%s2372_s21] sm:$0xf]  ;;  %v2390_v8 = vld [vmem:[%s2372_s21 + $0xc] sm:$0xf]  ;;  %v2399_v12 = vld [vmem:[%s2372_s21 + $0x4] sm:$0xf] }
  0x3c   : > { %v2378_v3 = vshrl.u32 %v289_v0, 7  ;;  %v2402_v13 = vld [vmem:[%s2372_s21 + $0x14] sm:$0xf]  ;;  %v2405_v14 = vld [vmem:[%s2372_s21 + $0x10] sm:$0xf]  ;;  %s3081_s29 = scalar_lea.vmem [#allocation5], %s1951_s18 }
  0x3d   : > { %v288_v4 = vunpack.c.0.s8 %v287_v2  ;;  %v2417_v25 = vld [vmem:[%s2372_s21 + $0x1c] sm:$0xf]  ;;  %v2423_v30 = vld [vmem:[%s2372_s21 + $0x18] sm:$0xf]  ;;  %v2428_v35 = vld [vmem:[%s2372_s21 + $0x24] sm:$0xf] }
  0x3e   : > { %v2431_v36 = vld [vmem:[%s2372_s21 + $0x20] sm:$0xf]  ;;  %v2440_v44 = vld [vmem:[%s2372_s21 + $0x2c] sm:$0xf]  ;;  %v2451_v56 = vld [vmem:[%s2372_s21 + $0x28] sm:$0xf] }
  0x3f   : > { %v2381_v5 = vsub.s32 %v288_v4, %v2378_v3  ;;  %v2458_v61 = vld [vmem:[%s2372_s21 + $0x34] sm:$0xf]  ;;  %v2461_v62 = vld [vmem:[%s2372_s21 + $0x30] sm:$0xf]  ;;  %s1959_s18 = sshll.u32 %s2215_s15, 10  ;;  %s1824_s30 = sshll.u32 %s3081_s29, 4  ;;  %s3161_s30 = int_to_ptr.vmem [resolvable:$true] %s1824_s30 }
  0x40   : > { %s3159_s7 = scalar_lea.hbm %s3214_s3, %s1959_s18  ;;  %s1808_s15 = scalar_lea.sflag [#allocation4], %s2366_s11 }
  0x41   : > { %v308_v9 = vrot.slane %v2384_v6, %v2381_v5  ;;  %v292_v10 = vrot.slane %v2387_v7, %v2381_v5  ;;  %v316_v11 = vrot.slane %v2390_v8, %v2381_v5  ;;  %v300_v15 = vrot.slane %v2399_v12, %v2381_v5  ;;  %s2141_s19 = scalar_lea.vmem %s3161_s30, 1024  ;;  %p3222_p9 = scmp.ne.s32.totalorder %s3218_s25, 0 }
  0x42   : > { %v332_v16 = vrot.slane %v2402_v13, %v2381_v5  ;;  %v324_v17 = vrot.slane %v2405_v14, %v2381_v5  ;;  %v348_v42 = vrot.slane %v2417_v25, %v2381_v5  ;;  %v340_v43 = vrot.slane %v2423_v30, %v2381_v5  ;;  %p2142_p8 = scmp.ne.s32.totalorder %s3161_s30, %s2141_s19 }
  0x43   : > { %v309_v18 = vcombine.high %v308_v9, %v308_v9  ;;  %v457_v19 = vsel %vm446_vm0, %v308_v9, 0.0  ;;  %v293_v20 = vcombine.high %v292_v10, %v292_v10  ;;  %v447_v21 = vsel %vm446_vm0, %v292_v10, 0.0 }
  0x44   : > { %v317_v22 = vcombine.high %v316_v11, %v316_v11  ;;  %v462_v23 = vsel %vm446_vm0, %v316_v11, 0.0  ;;  %v301_v24 = vcombine.high %v300_v15, %v300_v15  ;;  %v452_v28 = vsel %vm446_vm0, %v300_v15, 0.0  ;;  %p2143_p11 = pnand %p2142_p8, %p3222_p9 }
  0x45   : > { %v458_v26 = vsel %vm446_vm0, %v309_v18, 0.0  ;;  %v448_v27 = vsel %vm446_vm0, %v293_v20, 0.0  ;;  %v333_v29 = vcombine.high %v332_v16, %v332_v16  ;;  %v472_v38 = vsel %vm446_vm0, %v332_v16, 0.0  ;;  %v2474_v18 = vld [vmem:[%s2372_s21 + $0x3c] sm:$0xf] }
  0x46   : > { %v459_v31 = vadd.f32 %v458_v26, %v457_v19  ;;  %v449_v32 = vadd.f32 %v448_v27, %v447_v21  ;;  %v463_v33 = vsel %vm446_vm0, %v317_v22, 0.0  ;;  %v453_v34 = vsel %vm446_vm0, %v301_v24, 0.0  ;;  %v2477_v19 = vld [vmem:[%s2372_s21 + $0x38] sm:$0xf]  ;;  %p2144_p0 = pneg %p2143_p11 }
  0x47   : > { %v464_v37 = vadd.f32 %v463_v33, %v462_v23  ;;  %v325_v39 = vcombine.high %v324_v17, %v324_v17  ;;  %v454_v40 = vadd.f32 %v453_v34, %v452_v28  ;;  %v473_v41 = vsel %vm446_vm0, %v333_v29, 0.0 }
  0x48   : > { %460 = vadd.xlane.f32.xlu1 %v459_v31  ;;  %450 = vadd.xlane.f32.xlu0 %v449_v32  ;;  %v467_v45 = vsel %vm446_vm0, %v324_v17, 0.0  ;;  %v364_v47 = vrot.slane %v2428_v35, %v2381_v5  ;;  %v356_v48 = vrot.slane %v2431_v36, %v2381_v5  ;;  %v349_v49 = vcombine.high %v348_v42, %v348_v42 }
  0x49   : > { %v468_v46 = vsel %vm446_vm0, %v325_v39, 0.0  ;;  %v341_v50 = vcombine.high %v340_v43, %v340_v43  ;;  %v474_v51 = vadd.f32 %v473_v41, %v472_v38  ;;  %v380_v52 = vrot.slane %v2440_v44, %v2381_v5 }
  0x4a   : > { %v469_v53 = vadd.f32 %v468_v46, %v467_v45  ;;  %v365_v54 = vcombine.high %v364_v47, %v364_v47  ;;  %v357_v55 = vcombine.high %v356_v48, %v356_v48  ;;  %v482_v57 = vsel %vm446_vm0, %v348_v42, 0.0 }
  0x4b   : > { %v483_v58 = vsel %vm446_vm0, %v349_v49, 0.0  ;;  %v477_v59 = vsel %vm446_vm0, %v340_v43, 0.0  ;;  %v478_v60 = vsel %vm446_vm0, %v341_v50, 0.0  ;;  %v492_v63 = vsel %vm446_vm0, %v364_v47, 0.0 }
  0x4c   : > { %465 = vadd.xlane.f32.xlu1 %v464_v37  ;;  %455 = vadd.xlane.f32.xlu0 %v454_v40  ;;  %v487_v0 = vsel %vm446_vm0, %v356_v48, 0.0  ;;  %v381_v1 = vcombine.high %v380_v52, %v380_v52  ;;  %v372_v2 = vrot.slane %v2451_v56, %v2381_v5  ;;  %v484_v4 = vadd.f32 %v483_v58, %v482_v57 }
  0x4d   : > { %v479_v9 = vadd.f32 %v478_v60, %v477_v59  ;;  %v493_v10 = vsel %vm446_vm0, %v365_v54, 0.0  ;;  %v488_v11 = vsel %vm446_vm0, %v357_v55, 0.0  ;;  %v396_v16 = vrot.slane %v2458_v61, %v2381_v5 }
  0x4e   : > { %v373_v15 = vcombine.high %v372_v2, %v372_v2  ;;  %v388_v17 = vrot.slane %v2461_v62, %v2381_v5  ;;  %v640_v20 = vmul.f32 %v2399_v12, %v2399_v12  ;;  %v494_v21 = vadd.f32 %v493_v10, %v492_v63 }
  0x4f   : > { %v489_v22 = vadd.f32 %v488_v11, %v487_v0  ;;  %v639_v23 = vmul.f32 %v2387_v7, %v2387_v7  ;;  %v502_v24 = vsel %vm446_vm0, %v380_v52, 0.0  ;;  %v503_v26 = vsel %vm446_vm0, %v381_v1, 0.0 }
  0x50   : > { %475 = vadd.xlane.f32.xlu1 %v474_v51  ;;  %470 = vadd.xlane.f32.xlu0 %v469_v53  ;;  %v412_v27 = vrot.slane %v2474_v18, %v2381_v5  ;;  %v404_v28 = vrot.slane %v2477_v19, %v2381_v5  ;;  %v497_v29 = vsel %vm446_vm0, %v372_v2, 0.0  ;;  %v498_v12 = vsel %vm446_vm0, %v373_v15, 0.0 }
  0x51   : > { %v397_v31 = vcombine.high %v396_v16, %v396_v16  ;;  %v389_v32 = vcombine.high %v388_v17, %v388_v17  ;;  %v685_v7 = vrot.slane %v640_v20, %v2381_v5  ;;  %v504_v33 = vadd.f32 %v503_v26, %v502_v24 }
  0x52   : > { %v512_v34 = vsel %vm446_vm0, %v396_v16, 0.0  ;;  %v642_v37 = vmul.f32 %v2390_v8, %v2390_v8  ;;  %v499_v38 = vadd.f32 %v498_v12, %v497_v29  ;;  %v507_v39 = vsel %vm446_vm0, %v388_v17, 0.0 }
  0x53   : > { %v413_v40 = vcombine.high %v412_v27, %v412_v27  ;;  %v641_v41 = vmul.f32 %v2384_v6, %v2384_v6  ;;  %v513_v42 = vsel %vm446_vm0, %v397_v31, 0.0  ;;  %v508_v43 = vsel %vm446_vm0, %v389_v32, 0.0 }
  0x54   : > { %485 = vadd.xlane.f32.xlu1 %v484_v4  ;;  %480 = vadd.xlane.f32.xlu0 %v479_v9  ;;  %v405_v45 = vcombine.high %v404_v28, %v404_v28  ;;  %v677_v46 = vrot.slane %v639_v23, %v2381_v5  ;;  %v686_v47 = vcombine.high %v685_v7, %v685_v7  ;;  %v522_v51 = vsel %vm446_vm0, %v412_v27, 0.0 }
  0x55   : > { %v644_v8 = vmul.f32 %v2402_v13, %v2402_v13  ;;  %v701_v48 = vrot.slane %v642_v37, %v2381_v5  ;;  %v643_v49 = vmul.f32 %v2405_v14, %v2405_v14  ;;  %v514_v50 = vadd.f32 %v513_v42, %v512_v34 }
  0x56   : > { %v509_v6 = vadd.f32 %v508_v43, %v507_v39  ;;  %v693_v52 = vrot.slane %v641_v41, %v2381_v5  ;;  %v523_v53 = vsel %vm446_vm0, %v413_v40, 0.0  ;;  %v517_v54 = vsel %vm446_vm0, %v404_v28, 0.0 }
  0x57   : > { %v518_v55 = vsel %vm446_vm0, %v405_v45, 0.0  ;;  %v678_v13 = vcombine.high %v677_v46, %v677_v46  ;;  %v836_v57 = vsel %vm446_vm0, %v685_v7, 0.0  ;;  %v837_v58 = vsel %vm446_vm0, %v686_v47, 0.0 }
  0x58   : > { %495 = vadd.xlane.f32.xlu1 %v494_v21  ;;  %490 = vadd.xlane.f32.xlu0 %v489_v22  ;;  %v717_v14 = vrot.slane %v644_v8, %v2381_v5  ;;  %v702_v59 = vcombine.high %v701_v48, %v701_v48  ;;  %v709_v60 = vrot.slane %v643_v49, %v2381_v5  ;;  %v831_v9 = vsel %vm446_vm0, %v677_v46, 0.0 }
  0x59   : > { %v646_v63 = vmul.f32 %v2417_v25, %v2417_v25  ;;  %v645_v0 = vmul.f32 %v2423_v30, %v2423_v30  ;;  %v524_v1 = vadd.f32 %v523_v53, %v522_v51  ;;  %v519_v2 = vadd.f32 %v518_v55, %v517_v54 }
  0x5a   : > { %v694_v4 = vcombine.high %v693_v52, %v693_v52  ;;  %v832_v10 = vsel %vm446_vm0, %v678_v13, 0.0  ;;  %v838_v11 = vadd.f32 %v837_v58, %v836_v57  ;;  %v846_v15 = vsel %vm446_vm0, %v701_v48, 0.0 }
  0x5b   : > { %v718_v16 = vcombine.high %v717_v14, %v717_v14  ;;  %v847_v17 = vsel %vm446_vm0, %v702_v59, 0.0  ;;  %v710_v20 = vcombine.high %v709_v60, %v709_v60  ;;  %v733_v25 = vrot.slane %v646_v63, %v2381_v5 }
  0x5c   : > { %505 = vadd.xlane.f32.xlu1 %v504_v33  ;;  %500 = vadd.xlane.f32.xlu0 %v499_v38  ;;  %v725_v30 = vrot.slane %v645_v0, %v2381_v5  ;;  %v833_v21 = vadd.f32 %v832_v10, %v831_v9  ;;  %v841_v22 = vsel %vm446_vm0, %v693_v52, 0.0  ;;  %v842_v23 = vsel %vm446_vm0, %v694_v4, 0.0 }
  0x5d   : > { %v648_v24 = vmul.f32 %v2428_v35, %v2428_v35  ;;  %v647_v26 = vmul.f32 %v2431_v36, %v2431_v36  ;;  %v848_v27 = vadd.f32 %v847_v17, %v846_v15  ;;  %v856_v28 = vsel %vm446_vm0, %v717_v14, 0.0 }
  0x5e   : > { %v857_v29 = vsel %vm446_vm0, %v718_v16, 0.0  ;;  %v851_v12 = vsel %vm446_vm0, %v709_v60, 0.0  ;;  %v843_v31 = vadd.f32 %v842_v23, %v841_v22  ;;  %v852_v32 = vsel %vm446_vm0, %v710_v20, 0.0 }
  0x5f   : > { %v734_v7 = vcombine.high %v733_v25, %v733_v25  ;;  %v726_v33 = vcombine.high %v725_v30, %v725_v30  ;;  %v749_v34 = vrot.slane %v648_v24, %v2381_v5  ;;  %v650_v35 = vmul.f32 %v2440_v44, %v2440_v44 }
  0x60   : > { %515 = vadd.xlane.f32.xlu1 %v514_v50  ;;  %510 = vadd.xlane.f32.xlu0 %v509_v6  ;;  %v649_v36 = vmul.f32 %v2451_v56, %v2451_v56  ;;  %v741_v37 = vrot.slane %v647_v26, %v2381_v5  ;;  %v858_v38 = vadd.f32 %v857_v29, %v856_v28  ;;  %v866_v40 = vsel %vm446_vm0, %v733_v25, 0.0 }
  0x61   : > { %v853_v39 = vadd.f32 %v852_v32, %v851_v12  ;;  %v867_v41 = vsel %vm446_vm0, %v734_v7, 0.0  ;;  %v861_v42 = vsel %vm446_vm0, %v725_v30, 0.0  ;;  %v652_v43 = vmul.f32 %v2458_v61, %v2458_v61 }
  0x62   : > { %v862_v44 = vsel %vm446_vm0, %v726_v33, 0.0  ;;  %v750_v45 = vcombine.high %v749_v34, %v749_v34  ;;  %v765_v56 = vrot.slane %v650_v35, %v2381_v5  ;;  %v757_v46 = vrot.slane %v649_v36, %v2381_v5 }
  0x63   : > { %v742_v47 = vcombine.high %v741_v37, %v741_v37  ;;  %v651_v8 = vmul.f32 %v2461_v62, %v2461_v62  ;;  %v868_v48 = vadd.f32 %v867_v41, %v866_v40  ;;  %v863_v49 = vadd.f32 %v862_v44, %v861_v42 }
  0x64   : > { %525 = vadd.xlane.f32.xlu1 %v524_v1  ;;  %520 = vadd.xlane.f32.xlu0 %v519_v2  ;;  %v876_v50 = vsel %vm446_vm0, %v749_v34, 0.0  ;;  %v871_v6 = vsel %vm446_vm0, %v741_v37, 0.0  ;;  %v877_v61 = vsel %vm446_vm0, %v750_v45, 0.0  ;;  %v766_v51 = vcombine.high %v765_v56, %v765_v56 }
  0x65   : > { %v758_v52 = vcombine.high %v757_v46, %v757_v46  ;;  %v781_v53 = vrot.slane %v652_v43, %v2381_v5  ;;  %v872_v54 = vsel %vm446_vm0, %v742_v47, 0.0  ;;  %v773_v55 = vrot.slane %v651_v8, %v2381_v5 }
  0x66   : > { %v654_v62 = vmul.f32 %v2474_v18, %v2474_v18  ;;  %v653_v13 = vmul.f32 %v2477_v19, %v2477_v19  ;;  %v886_v57 = vsel %vm446_vm0, %v765_v56, 0.0  ;;  %v881_v58 = vsel %vm446_vm0, %v757_v46, 0.0 }
  0x67   : > { %v878_v14 = vadd.f32 %v877_v61, %v876_v50  ;;  %v873_v59 = vadd.f32 %v872_v54, %v871_v6  ;;  %v887_v60 = vsel %vm446_vm0, %v766_v51, 0.0  ;;  %v782_v63 = vcombine.high %v781_v53, %v781_v53 }
  0x68   : > { %839 = vadd.xlane.f32.xlu1 %v838_v11  ;;  %834 = vadd.xlane.f32.xlu0 %v833_v21  ;;  %v882_v0 = vsel %vm446_vm0, %v758_v52, 0.0  ;;  %v774_v1 = vcombine.high %v773_v55, %v773_v55  ;;  %v797_v2 = vrot.slane %v654_v62, %v2381_v5  ;;  %v789_v18 = vrot.slane %v653_v13, %v2381_v5 }
  0x69   : > { %v888_v19 = vadd.f32 %v887_v60, %v886_v57  ;;  %v883_v4 = vadd.f32 %v882_v0, %v881_v58  ;;  %v896_v9 = vsel %vm446_vm0, %v781_v53, 0.0  ;;  %v897_v10 = vsel %vm446_vm0, %v782_v63, 0.0 }
  0x6a   : > { %v891_v11 = vsel %vm446_vm0, %v773_v55, 0.0  ;;  %v892_v15 = vsel %vm446_vm0, %v774_v1, 0.0  ;;  %v798_v16 = vcombine.high %v797_v2, %v797_v2  ;;  %v790_v17 = vcombine.high %v789_v18, %v789_v18 }
  0x6b   : > { %v898_v20 = vadd.f32 %v897_v10, %v896_v9  ;;  %v893_v25 = vadd.f32 %v892_v15, %v891_v11  ;;  %v906_v5 = vsel %vm446_vm0, %v797_v2, 0.0  ;;  %v901_v21 = vsel %vm446_vm0, %v789_v18, 0.0 }
  0x6c   : > { %849 = vadd.xlane.f32.xlu1 %v848_v27  ;;  %844 = vadd.xlane.f32.xlu0 %v843_v31  ;;  %v907_v30 = vsel %vm446_vm0, %v798_v16, 0.0  ;;  %v902_v22 = vsel %vm446_vm0, %v790_v17, 0.0  ;;  %v2229_v26 = vmov 0  }
  0x6d   : > { %v908_v23 = vadd.f32 %v907_v30, %v906_v5  ;;  %v903_v24 = vadd.f32 %v902_v22, %v901_v21  ;;  %2030 = vset.pattern.permute.xlu1 %v2229_v26  ;;  %2029 = vset.pattern.permute.xlu0 %v2229_v26 }
  0x70   : > { %859 = vadd.xlane.f32.xlu1 %v858_v38  ;;  %854 = vadd.xlane.f32.xlu0 %v853_v39 }
  0x74   : > { %869 = vadd.xlane.f32.xlu1 %v868_v48  ;;  %864 = vadd.xlane.f32.xlu0 %v863_v49 }
  0x78   : > { %879 = vadd.xlane.f32.xlu1 %v878_v14  ;;  %874 = vadd.xlane.f32.xlu0 %v873_v59 }
  0x7c   : > { %889 = vadd.xlane.f32.xlu1 %v888_v19  ;;  %884 = vadd.xlane.f32.xlu0 %v883_v4 }
  0x80   : > { %899 = vadd.xlane.f32.xlu1 %v898_v20  ;;  %894 = vadd.xlane.f32.xlu0 %v893_v25 }
  0x84   : > { %909 = vadd.xlane.f32.xlu1 %v908_v23  ;;  %904 = vadd.xlane.f32.xlu0 %v903_v24 }
  0xd5   : > { %v461_v27 = vpop.xlane.xlu1 %460  ;;  %v451_v28 = vpop.xlane.xlu0 %450 }
  0xd6   : > { %v541_v29 = vsel %vm446_vm0, %v461_v27, 0.0  ;;  %v527_v12 = vsel %vm446_vm0, %v451_v28, 0.0 }
  0xd7   : > { %v542_v31 = vrot.slane %v541_v29, 4  ;;  %v528_v32 = vrot.slane %v527_v12, 4 }
  0xd9   : > { %v543_v7 = vadd.f32 %v542_v31, %v541_v29  ;;  %v529_v33 = vadd.f32 %v528_v32, %v527_v12  ;;  %v466_v34 = vpop.xlane.xlu1 %465  ;;  %v456_v35 = vpop.xlane.xlu0 %455 }
  0xda   : > { %v548_v36 = vsel %vm446_vm0, %v466_v34, 0.0  ;;  %v534_v37 = vsel %vm446_vm0, %v456_v35, 0.0 }
  0xdb   : > { %v544_v38 = vrot.slane %v543_v7, 2  ;;  %v530_v39 = vrot.slane %v529_v33, 2  ;;  %v549_v40 = vrot.slane %v548_v36, 4  ;;  %v535_v41 = vrot.slane %v534_v37, 4 }
  0xdd   : > { %v545_v42 = vadd.f32 %v544_v38, %v543_v7  ;;  %v531_v43 = vadd.f32 %v530_v39, %v529_v33  ;;  %v550_v44 = vadd.f32 %v549_v40, %v548_v36  ;;  %v536_v45 = vadd.f32 %v535_v41, %v534_v37  ;;  %v476_v56 = vpop.xlane.xlu1 %475  ;;  %v471_v46 = vpop.xlane.xlu0 %470 }
  0xde   : > { %v562_v47 = vsel %vm446_vm0, %v476_v56, 0.0  ;;  %v555_v8 = vsel %vm446_vm0, %v471_v46, 0.0 }
  0xdf   : > { %v546_v48 = vrot.slane %v545_v42, 1  ;;  %v532_v49 = vrot.slane %v531_v43, 1  ;;  %v551_v50 = vrot.slane %v550_v44, 2  ;;  %v537_v6 = vrot.slane %v536_v45, 2 }
  0xe0   : > { %v563_v61 = vrot.slane %v562_v47, 4  ;;  %v556_v51 = vrot.slane %v555_v8, 4 }
  0xe1   : > { %v547_v52 = vadd.f32 %v546_v48, %v545_v42  ;;  %v533_v53 = vadd.f32 %v532_v49, %v531_v43  ;;  %v552_v54 = vadd.f32 %v551_v50, %v550_v44  ;;  %v538_v55 = vadd.f32 %v537_v6, %v536_v45  ;;  %v486_v62 = vpop.xlane.xlu1 %485  ;;  %v481_v13 = vpop.xlane.xlu0 %480 }
  0xe2   : > { %v564_v57 = vadd.f32 %v563_v61, %v562_v47  ;;  %v557_v58 = vadd.f32 %v556_v51, %v555_v8  ;;  %v576_v14 = vsel %vm446_vm0, %v486_v62, 0.0  ;;  %v569_v59 = vsel %vm446_vm0, %v481_v13, 0.0 }
  0xe3   : > { %v2583_v60 = vmul.f32 0.001953125, %v547_v52  ;;  %v2585_v63 = vmul.f32 0.001953125, %v533_v53  ;;  %v553_v0 = vrot.slane %v552_v54, 1  ;;  %v539_v1 = vrot.slane %v538_v55, 1 }
  0xe4   : > { %v565_v2 = vrot.slane %v564_v57, 2  ;;  %v558_v18 = vrot.slane %v557_v58, 2  ;;  %v577_v19 = vrot.slane %v576_v14, 4  ;;  %v570_v4 = vrot.slane %v569_v59, 4 }
  0xe5   : > { %v2588_v9 = vmul.f32 %v2583_v60, %v547_v52  ;;  %v554_v10 = vadd.f32 %v553_v0, %v552_v54  ;;  %v540_v11 = vadd.f32 %v539_v1, %v538_v55  ;;  %v496_v15 = vpop.xlane.xlu1 %495  ;;  %v491_v16 = vpop.xlane.xlu0 %490  ;;  %v2591_v30 = vmul.f32 %v2585_v63, %v533_v53 }
  0xe6   : > { %v566_v17 = vadd.f32 %v565_v2, %v564_v57  ;;  %v559_v20 = vadd.f32 %v558_v18, %v557_v58  ;;  %v578_v25 = vadd.f32 %v577_v19, %v576_v14  ;;  %v571_v5 = vadd.f32 %v570_v4, %v569_v59 }
  0xe7   : > { %v2593_v21 = vmul.f32 0.001953125, %v554_v10  ;;  %v590_v22 = vsel %vm446_vm0, %v496_v15, 0.0  ;;  %v583_v23 = vsel %vm446_vm0, %v491_v16, 0.0  ;;  %v2600_v12 = vmul.f32 0.001953125, %v540_v11 }
  0xe8   : > { %v567_v24 = vrot.slane %v566_v17, 1  ;;  %v560_v26 = vrot.slane %v559_v20, 1  ;;  %v579_v27 = vrot.slane %v578_v25, 2  ;;  %v572_v28 = vrot.slane %v571_v5, 2 }
  0xe9   : > { %v2598_v29 = vmul.f32 %v2593_v21, %v554_v10  ;;  %v591_v31 = vrot.slane %v590_v22, 4  ;;  %v584_v32 = vrot.slane %v583_v23, 4  ;;  %v506_v7 = vpop.xlane.xlu1 %505  ;;  %v501_v33 = vpop.xlane.xlu0 %500  ;;  %v2609_v50 = vmul.f32 %v2600_v12, %v540_v11 }
  0xea   : > { %v568_v34 = vadd.f32 %v567_v24, %v566_v17  ;;  %v561_v35 = vadd.f32 %v560_v26, %v559_v20  ;;  %v580_v36 = vadd.f32 %v579_v27, %v578_v25  ;;  %v573_v37 = vadd.f32 %v572_v28, %v571_v5 }
  0xeb   : > { %v592_v38 = vadd.f32 %v591_v31, %v590_v22  ;;  %v585_v39 = vadd.f32 %v584_v32, %v583_v23  ;;  %v604_v40 = vsel %vm446_vm0, %v506_v7, 0.0  ;;  %v597_v41 = vsel %vm446_vm0, %v501_v33, 0.0 }
  0xec   : > { %v2604_v42 = vmul.f32 0.001953125, %v568_v34  ;;  %v2606_v43 = vmul.f32 0.001953125, %v561_v35  ;;  %v581_v44 = vrot.slane %v580_v36, 1  ;;  %v574_v45 = vrot.slane %v573_v37, 1 }
  0xed   : > { %v593_v56 = vrot.slane %v592_v38, 2  ;;  %v586_v46 = vrot.slane %v585_v39, 2  ;;  %v605_v47 = vrot.slane %v604_v40, 4  ;;  %v598_v8 = vrot.slane %v597_v41, 4  ;;  %v516_v48 = vpop.xlane.xlu1 %515  ;;  %v511_v49 = vpop.xlane.xlu0 %510 }
  0xee   : > { %v2612_v6 = vmul.f32 %v2604_v42, %v568_v34  ;;  %v582_v61 = vadd.f32 %v581_v44, %v580_v36  ;;  %v575_v51 = vadd.f32 %v574_v45, %v573_v37  ;;  %v2615_v62 = vmul.f32 %v2606_v43, %v561_v35 }
  0xef   : > { %v594_v52 = vadd.f32 %v593_v56, %v592_v38  ;;  %v587_v53 = vadd.f32 %v586_v46, %v585_v39  ;;  %v606_v54 = vadd.f32 %v605_v47, %v604_v40  ;;  %v599_v55 = vadd.f32 %v598_v8, %v597_v41 }
  0xf0   : > { %v2617_v13 = vmul.f32 0.001953125, %v582_v61  ;;  %v618_v57 = vsel %vm446_vm0, %v516_v48, 0.0  ;;  %v611_v58 = vsel %vm446_vm0, %v511_v49, 0.0  ;;  %v2624_v4 = vmul.f32 0.001953125, %v575_v51 }
  0xf1   : > { %v595_v14 = vrot.slane %v594_v52, 1  ;;  %v588_v59 = vrot.slane %v587_v53, 1  ;;  %v607_v0 = vrot.slane %v606_v54, 2  ;;  %v600_v1 = vrot.slane %v599_v55, 2  ;;  %v526_v2 = vpop.xlane.xlu1 %525  ;;  %v521_v18 = vpop.xlane.xlu0 %520 }
  0xf2   : > { %v2622_v19 = vmul.f32 %v2617_v13, %v582_v61  ;;  %v619_v10 = vrot.slane %v618_v57, 4  ;;  %v612_v11 = vrot.slane %v611_v58, 4  ;;  %v632_v22 = vsel %vm446_vm0, %v526_v2, 0.0 }
  0xf3   : > { %v596_v15 = vadd.f32 %v595_v14, %v594_v52  ;;  %v589_v16 = vadd.f32 %v588_v59, %v587_v53  ;;  %v608_v17 = vadd.f32 %v607_v0, %v606_v54  ;;  %v601_v20 = vadd.f32 %v600_v1, %v599_v55 }
  0xf4   : > { %v620_v25 = vadd.f32 %v619_v10, %v618_v57  ;;  %v613_v5 = vadd.f32 %v612_v11, %v611_v58  ;;  %v625_v23 = vsel %vm446_vm0, %v521_v18, 0.0  ;;  %v633_v34 = vrot.slane %v632_v22, 4 }
  0xf5   : > { %v2628_v24 = vmul.f32 0.001953125, %v596_v15  ;;  %v2630_v26 = vmul.f32 0.001953125, %v589_v16  ;;  %v609_v27 = vrot.slane %v608_v17, 1  ;;  %v602_v28 = vrot.slane %v601_v20, 1  ;;  %v840_v31 = vpop.xlane.xlu1 %839  ;;  %v835_v32 = vpop.xlane.xlu0 %834 }
  0xf6   : > { %v621_v7 = vrot.slane %v620_v25, 2  ;;  %v614_v33 = vrot.slane %v613_v5, 2  ;;  %v626_v35 = vrot.slane %v625_v23, 4  ;;  %v2633_v36 = vmul.f32 %v2624_v4, %v575_v51 }
  0xf7   : > { %v2636_v37 = vmul.f32 %v2628_v24, %v596_v15  ;;  %v610_v38 = vadd.f32 %v609_v27, %v608_v17  ;;  %v603_v39 = vadd.f32 %v602_v28, %v601_v20  ;;  %v634_v44 = vadd.f32 %v633_v34, %v632_v22 }
  0xf8   : > { %v622_v40 = vadd.f32 %v621_v7, %v620_v25  ;;  %v615_v41 = vadd.f32 %v614_v33, %v613_v5  ;;  %v627_v45 = vadd.f32 %v626_v35, %v625_v23  ;;  %v2639_v56 = vmul.f32 %v2630_v26, %v589_v16 }
  0xf9   : > { %v2641_v46 = vmul.f32 0.001953125, %v610_v38  ;;  %v918_v47 = vsel %vm446_vm0, %v840_v31, 0.0  ;;  %v911_v8 = vsel %vm446_vm0, %v835_v32, 0.0  ;;  %v850_v48 = vpop.xlane.xlu1 %849  ;;  %v845_v49 = vpop.xlane.xlu0 %844  ;;  %v635_v52 = vrot.slane %v634_v44, 2 }
  0xfa   : > { %v623_v61 = vrot.slane %v622_v40, 1  ;;  %v616_v51 = vrot.slane %v615_v41, 1  ;;  %v628_v53 = vrot.slane %v627_v45, 2  ;;  %v2648_v55 = vmul.f32 0.001953125, %v603_v39 }
  0xfb   : > { %v2646_v54 = vmul.f32 %v2641_v46, %v610_v38  ;;  %v919_v57 = vrot.slane %v918_v47, 4  ;;  %v912_v58 = vrot.slane %v911_v8, 4  ;;  %v636_v0 = vadd.f32 %v635_v52, %v634_v44 }
  0xfc   : > { %v624_v14 = vadd.f32 %v623_v61, %v622_v40  ;;  %v617_v59 = vadd.f32 %v616_v51, %v615_v41  ;;  %v629_v1 = vadd.f32 %v628_v53, %v627_v45  ;;  %v932_v10 = vsel %vm446_vm0, %v850_v48, 0.0 }
  0xfd   : > { %v920_v2 = vadd.f32 %v919_v57, %v918_v47  ;;  %v913_v18 = vadd.f32 %v912_v58, %v911_v8  ;;  %v925_v11 = vsel %vm446_vm0, %v845_v49, 0.0  ;;  %v860_v15 = vpop.xlane.xlu1 %859  ;;  %v855_v16 = vpop.xlane.xlu0 %854  ;;  %v637_v25 = vrot.slane %v636_v0, 1 }
  0xfe   : > { %v2652_v17 = vmul.f32 0.001953125, %v624_v14  ;;  %v2654_v20 = vmul.f32 0.001953125, %v617_v59  ;;  %v630_v5 = vrot.slane %v629_v1, 1  ;;  %v933_v27 = vrot.slane %v932_v10, 4 }
  0xff   : > { %v921_v22 = vrot.slane %v920_v2, 2  ;;  %v914_v23 = vrot.slane %v913_v18, 2  ;;  %v926_v28 = vrot.slane %v925_v11, 4  ;;  %v2657_v31 = vmul.f32 %v2648_v55, %v603_v39 }
 0x100   : > { %v2660_v32 = vmul.f32 %v2652_v17, %v624_v14  ;;  %v638_v7 = vadd.f32 %v637_v25, %v636_v0  ;;  %v631_v33 = vadd.f32 %v630_v5, %v629_v1  ;;  %v934_v38 = vadd.f32 %v933_v27, %v932_v10 }
 0x101   : > { %v922_v34 = vadd.f32 %v921_v22, %v920_v2  ;;  %v915_v35 = vadd.f32 %v914_v23, %v913_v18  ;;  %v927_v40 = vadd.f32 %v926_v28, %v925_v11  ;;  %v870_v41 = vpop.xlane.xlu1 %869  ;;  %v2663_v44 = vmul.f32 %v2654_v20, %v617_v59  ;;  %v865_v51 = vpop.xlane.xlu0 %864 }
 0x102   : > { %v2665_v45 = vmul.f32 0.001953125, %v638_v7  ;;  %v946_v47 = vsel %vm446_vm0, %v860_v15, 0.0  ;;  %v939_v39 = vsel %vm446_vm0, %v855_v16, 0.0  ;;  %v935_v49 = vrot.slane %v934_v38, 2 }
 0x103   : > { %v923_v8 = vrot.slane %v922_v34, 1  ;;  %v916_v48 = vrot.slane %v915_v35, 1  ;;  %v928_v61 = vrot.slane %v927_v40, 2  ;;  %v2672_v53 = vmul.f32 0.001953125, %v631_v33 }
 0x104   : > { %v2670_v52 = vmul.f32 %v2665_v45, %v638_v7  ;;  %v947_v57 = vrot.slane %v946_v47, 4  ;;  %v940_v58 = vrot.slane %v939_v39, 4  ;;  %v936_v0 = vadd.f32 %v935_v49, %v934_v38 }
 0x105   : > { %v924_v14 = vadd.f32 %v923_v8, %v922_v34  ;;  %v917_v59 = vadd.f32 %v916_v48, %v915_v35  ;;  %v929_v1 = vadd.f32 %v928_v61, %v927_v40  ;;  %v960_v10 = vsel %vm446_vm0, %v870_v41, 0.0  ;;  %v880_v22 = vpop.xlane.xlu1 %879 }
 0x106   : > { %v948_v2 = vadd.f32 %v947_v57, %v946_v47  ;;  %v941_v18 = vadd.f32 %v940_v58, %v939_v39  ;;  %v953_v11 = vsel %vm446_vm0, %v865_v51, 0.0  ;;  %v937_v25 = vrot.slane %v936_v0, 1  ;;  %v875_v47 = vpop.xlane.xlu0 %874 }
 0x107   : > { %v1056_v15 = vsub.f32 %v924_v14, %v2609_v50  ;;  %v1055_v16 = vsub.f32 %v917_v59, %v2591_v30  ;;  %v930_v5 = vrot.slane %v929_v1, 1  ;;  %v961_v28 = vrot.slane %v960_v10, 4 }
 0x108   : > { %v949_v23 = vrot.slane %v948_v2, 2  ;;  %v942_v27 = vrot.slane %v941_v18, 2  ;;  %v954_v7 = vrot.slane %v953_v11, 4  ;;  %v938_v38 = vadd.f32 %v937_v25, %v936_v0 }
 0x109   : > { %v1072_v34 = vmul.f32 0.0019569471, %v1056_v15  ;;  %v1071_v35 = vmul.f32 0.0019569471, %v1055_v16  ;;  %v931_v40 = vadd.f32 %v930_v5, %v929_v1  ;;  %v962_v8 = vadd.f32 %v961_v28, %v960_v10 }
 0x10a   : > { %v950_v39 = vadd.f32 %v949_v23, %v948_v2  ;;  %v943_v41 = vadd.f32 %v942_v27, %v941_v18  ;;  %v955_v48 = vadd.f32 %v954_v7, %v953_v11  ;;  %v1058_v30 = vsub.f32 %v938_v38, %v2598_v29  ;;  %v890_v18 = vpop.xlane.xlu1 %889  ;;  %v885_v25 = vpop.xlane.xlu0 %884 }
 0x10b   : > { %v2678_v49 = vmax.f32 %v1072_v34, 0.0  ;;  %v2680_v50 = vmax.f32 %v1071_v35, 0.0  ;;  %v1057_v61 = vsub.f32 %v931_v40, %v2588_v9  ;;  %v963_v58 = vrot.slane %v962_v8, 2 }
 0x10c   : > { %v951_v51 = vrot.slane %v950_v39, 1  ;;  %v944_v57 = vrot.slane %v943_v41, 1  ;;  %v956_v14 = vrot.slane %v955_v48, 2  ;;  %v2685_v59 = vmul.f32 %v2672_v53, %v631_v33 }
 0x10d   : > { %v1074_v0 = vmul.f32 0.0019569471, %v1058_v30  ;;  %v1073_v1 = vmul.f32 0.0019569471, %v1057_v61  ;;  %v974_v2 = vsel %vm446_vm0, %v880_v22, 0.0  ;;  %2031 = vrsqrt.f32 %v2678_v49 }
 0x10e   : > { %v952_v10 = vadd.f32 %v951_v51, %v950_v39  ;;  %v945_v11 = vadd.f32 %v944_v57, %v943_v41  ;;  %v964_v15 = vadd.f32 %v963_v58, %v962_v8  ;;  %2033 = vrsqrt.f32 %v2680_v50 }
 0x10f   : > { %v2690_v9 = vmax.f32 %v1074_v0, 0.0  ;;  %v957_v29 = vadd.f32 %v956_v14, %v955_v48  ;;  %v975_v16 = vrot.slane %v974_v2, 4  ;;  %v967_v22 = vsel %vm446_vm0, %v875_v47, 0.0  ;;  %v900_v48 = vpop.xlane.xlu1 %899  ;;  %v895_v0 = vpop.xlane.xlu0 %894 }
 0x110   : > { %v1060_v33 = vsub.f32 %v952_v10, %v2612_v6  ;;  %v1059_v5 = vsub.f32 %v945_v11, %v2615_v62  ;;  %v965_v23 = vrot.slane %v964_v15, 1  ;;  %v2695_v27 = vmax.f32 %v1073_v1, 0.0 }
 0x111   : > { %v958_v28 = vrot.slane %v957_v29, 1  ;;  %v976_v7 = vadd.f32 %v975_v16, %v974_v2  ;;  %v968_v34 = vrot.slane %v967_v22, 4  ;;  %2035 = vrsqrt.f32 %v2690_v9 }
 0x112   : > { %v1076_v35 = vmul.f32 0.0019569471, %v1060_v33  ;;  %v1075_v38 = vmul.f32 0.0019569471, %v1059_v5  ;;  %v966_v40 = vadd.f32 %v965_v23, %v964_v15  ;;  %v988_v6 = vsel %vm446_vm0, %v890_v18, 0.0 }
 0x113   : > { %v959_v39 = vadd.f32 %v958_v28, %v957_v29  ;;  %v977_v41 = vrot.slane %v976_v7, 2  ;;  %v969_v8 = vadd.f32 %v968_v34, %v967_v22  ;;  %v989_v61 = vrot.slane %v988_v6, 4  ;;  %v910_v28 = vpop.xlane.xlu1 %909 }
 0x114   : > { %v2699_v62 = vmax.f32 %v1076_v35, 0.0  ;;  %v2701_v30 = vmax.f32 %v1075_v38, 0.0  ;;  %v1062_v47 = vsub.f32 %v966_v40, %v2622_v19  ;;  %v981_v14 = vsel %vm446_vm0, %v885_v25, 0.0 }
 0x115   : > { %v1061_v51 = vsub.f32 %v959_v39, %v2633_v36  ;;  %v978_v57 = vadd.f32 %v977_v41, %v976_v7  ;;  %v970_v58 = vrot.slane %v969_v8, 2  ;;  %2037 = vrsqrt.f32 %v2695_v27 }
 0x116   : > { %v1078_v1 = vmul.f32 0.0019569471, %v1062_v47  ;;  %v990_v2 = vadd.f32 %v989_v61, %v988_v6  ;;  %v982_v18 = vrot.slane %v981_v14, 4  ;;  %2039 = vrsqrt.f32 %v2699_v62 }
 0x117   : > { %v1077_v10 = vmul.f32 0.0019569471, %v1061_v51  ;;  %v979_v11 = vrot.slane %v978_v57, 1  ;;  %v971_v15 = vadd.f32 %v970_v58, %v969_v8  ;;  %v2032_v29 = vpop.eup %2031  ;;  %v1002_v33 = vsel %vm446_vm0, %v900_v48, 0.0  ;;  %v905_v8 = vpop.xlane.xlu0 %904 }
 0x118   : > { %v2708_v19 = vmax.f32 %v1078_v1, 0.0  ;;  %v991_v16 = vrot.slane %v990_v2, 2  ;;  %v983_v36 = vadd.f32 %v982_v18, %v981_v14  ;;  %v2711_v5 = vpop.eup %2033  ;;  %2041 = vrsqrt.f32 %v2701_v30 }
 0x119   : > { %v980_v25 = vadd.f32 %v979_v11, %v978_v57  ;;  %v972_v23 = vrot.slane %v971_v15, 1  ;;  %v1003_v22 = vrot.slane %v1002_v33, 4  ;;  %v2714_v7 = vmax.f32 %v1077_v10, 0.0 }
 0x11a   : > { %v992_v34 = vadd.f32 %v991_v16, %v990_v2  ;;  %v984_v35 = vrot.slane %v983_v36, 2  ;;  %v995_v38 = vsel %vm446_vm0, %v895_v0, 0.0  ;;  %2043 = vrsqrt.f32 %v2708_v19 }
 0x11b   : > { %v1064_v40 = vsub.f32 %v980_v25, %v2636_v37  ;;  %v973_v39 = vadd.f32 %v972_v23, %v971_v15  ;;  %v1004_v41 = vadd.f32 %v1003_v22, %v1002_v33  ;;  %v2719_v6 = vpop.eup %2035  ;;  %v996_v61 = vrot.slane %v995_v38, 4 }
 0x11c   : > { %v993_v48 = vrot.slane %v992_v34, 1  ;;  %v985_v47 = vadd.f32 %v984_v35, %v983_v36  ;;  %v1016_v51 = vsel %vm446_vm0, %v910_v28, 0.0  ;;  %v1009_v37 = vsel %vm446_vm0, %v905_v8, 0.0 }
 0x11d   : > { %v1080_v57 = vmul.f32 0.0019569471, %v1064_v40  ;;  %v1063_v58 = vsub.f32 %v973_v39, %v2639_v56  ;;  %v1005_v14 = vrot.slane %v1004_v41, 2  ;;  %v1017_v1 = vrot.slane %v1016_v51, 4 }
 0x11e   : > { %v994_v0 = vadd.f32 %v993_v48, %v992_v34  ;;  %v986_v2 = vrot.slane %v985_v47, 1  ;;  %v997_v18 = vadd.f32 %v996_v61, %v995_v38  ;;  %v1010_v22 = vrot.slane %v1009_v37, 4 }
 0x11f   : > { %v2724_v10 = vmax.f32 %v1080_v57, 0.0  ;;  %v1079_v11 = vmul.f32 0.0019569471, %v1063_v58  ;;  %v1006_v15 = vadd.f32 %v1005_v14, %v1004_v41  ;;  %v1018_v16 = vadd.f32 %v1017_v1, %v1016_v51  ;;  %v2038_v33 = vpop.eup %2037 }
 0x120   : > { %v1066_v36 = vsub.f32 %v994_v0, %v2646_v54  ;;  %v987_v25 = vadd.f32 %v986_v2, %v985_v47  ;;  %v998_v23 = vrot.slane %v997_v18, 2  ;;  %v2727_v28 = vpop.eup %2039  ;;  %2045 = vrsqrt.f32 %v2714_v7 }
 0x121   : > { %v2730_v56 = vmax.f32 %v1079_v11, 0.0  ;;  %v1007_v34 = vrot.slane %v1006_v15, 1  ;;  %v1019_v35 = vrot.slane %v1018_v16, 2  ;;  %v1011_v41 = vadd.f32 %v1010_v22, %v1009_v37 }
 0x122   : > { %v1082_v38 = vmul.f32 0.0019569471, %v1066_v36  ;;  %v1065_v40 = vsub.f32 %v987_v25, %v2657_v31  ;;  %v999_v39 = vadd.f32 %v998_v23, %v997_v18  ;;  %v2733_v8 = vpop.eup %2041  ;;  %2047 = vrsqrt.f32 %v2724_v10 }
 0x123   : > { %v1008_v54 = vadd.f32 %v1007_v34, %v1006_v15  ;;  %v1020_v48 = vadd.f32 %v1019_v35, %v1018_v16  ;;  %v1111_v47 = vmul.f32 %v2032_v29, %v2678_v49  ;;  %v1012_v58 = vrot.slane %v1011_v41, 2 }
 0x124   : > { %v2737_v61 = vmax.f32 %v1082_v38, 0.0  ;;  %v1081_v51 = vmul.f32 0.0019569471, %v1065_v40  ;;  %v1000_v57 = vrot.slane %v999_v39, 1  ;;  %v2739_v14 = vpop.eup %2043  ;;  %2049 = vrsqrt.f32 %v2730_v56 }
 0x125   : > { %v1068_v31 = vsub.f32 %v1008_v54, %v2660_v32  ;;  %v1021_v1 = vrot.slane %v1020_v48, 1  ;;  %vm1112_vm1 = vcmp.eq.f32.partialorder %v2678_v49, inf  ;;  %v1013_v18 = vadd.f32 %v1012_v58, %v1011_v41 }
 0x126   : > { %v2744_v0 = vmax.f32 %v1081_v51, 0.0  ;;  %v1001_v2 = vadd.f32 %v1000_v57, %v999_v39  ;;  %vm1114_vm2 = vcmp.eq.f32.partialorder %v2678_v49, 0.0  ;;  %v1113_v11 = vsel %vm1112_vm1, %v2678_v49, %v1111_v47 }
 0x127   : > { %v1084_v29 = vmul.f32 0.0019569471, %v1068_v31  ;;  %v1022_v37 = vadd.f32 %v1021_v1, %v1020_v48  ;;  %v1115_v15 = vand.u32 2147483648, %v2678_v49  ;;  %2051 = vrsqrt.f32 %v2737_v61 }
 0x128   : > { %v1067_v16 = vsub.f32 %v1001_v2, %v2663_v44  ;;  %v1014_v32 = vrot.slane %v1013_v18, 1  ;;  %v1104_v36 = vmul.f32 %v2711_v5, %v2680_v50  ;;  %vm1105_vm3 = vcmp.eq.f32.partialorder %v2680_v50, inf }
 0x129   : > { %v2753_v25 = vmax.f32 %v1084_v29, 0.0  ;;  %v1070_v23 = vsub.f32 %v1022_v37, %v2670_v52  ;;  %v1116_v22 = vsel %vm1114_vm2, %v1115_v15, %v1113_v11  ;;  %2053 = vrsqrt.f32 %v2744_v0 }
 0x12a   : > { %v1083_v34 = vmul.f32 0.0019569471, %v1067_v16  ;;  %v1015_v35 = vadd.f32 %v1014_v32, %v1013_v18  ;;  %v1216_v38 = vadd.f32 1e-10, %v1116_v22  ;;  %v1106_v49 = vsel %vm1105_vm3, %v2680_v50, %v1104_v36  ;;  %v2758_v40 = vpop.eup %2045 }
 0x12b   : > { %v1086_v44 = vmul.f32 0.0019569471, %v1070_v23  ;;  %vm1107_vm4 = vcmp.eq.f32.partialorder %v2680_v50, 0.0  ;;  %v1108_v5 = vand.u32 2147483648, %v2680_v50  ;;  %v1118_v41 = vmul.f32 %v2038_v33, %v2695_v27 }
 0x12c   : > { %v2763_v39 = vmax.f32 %v1083_v34, 0.0  ;;  %v1069_v52 = vsub.f32 %v1015_v35, %v2685_v59  ;;  %2055 = vrcp.f32 %v1216_v38  ;;  %v2048_v54 = vpop.eup %2047  ;;  %vm1119_vm5 = vcmp.eq.f32.partialorder %v2695_v27, inf }
 0x12d   : > { %2057 = vrsqrt.f32 %v2753_v25  ;;  %v2768_v48 = vmax.f32 %v1086_v44, 0.0  ;;  %v1109_v47 = vsel %vm1107_vm4, %v1108_v5, %v1106_v49  ;;  %v1120_v50 = vsel %vm1119_vm5, %v2695_v27, %v1118_v41 }
 0x12e   : > { %2059 = vrsqrt.f32 %v2763_v39  ;;  %v1085_v51 = vmul.f32 0.0019569471, %v1069_v52  ;;  %v1215_v57 = vadd.f32 1e-10, %v1109_v47  ;;  %v2773_v58 = vpop.eup %2049  ;;  %vm1121_vm6 = vcmp.eq.f32.partialorder %v2695_v27, 0.0 }
 0x12f   : > { %2061 = vrsqrt.f32 %v2768_v48  ;;  %v1122_v59 = vand.u32 2147483648, %v2695_v27  ;;  %v1125_v33 = vmul.f32 %v2719_v6, %v2690_v9  ;;  %vm1126_vm7 = vcmp.eq.f32.partialorder %v2690_v9, inf }
 0x130   : > { %v2780_v31 = vmax.f32 %v1085_v51, 0.0  ;;  %2063 = vrcp.f32 %v1215_v57  ;;  %v1129_v1 = vand.u32 2147483648, %v2690_v9  ;;  %vm1128_vm8 = vcmp.eq.f32.partialorder %v2690_v9, 0.0 }
 0x131   : > { %v1123_v2 = vsel %vm1121_vm6, %v1122_v59, %v1120_v50  ;;  %v1127_v18 = vsel %vm1126_vm7, %v2690_v9, %v1125_v33  ;;  %v1132_v29 = vmul.f32 %v2733_v8, %v2701_v30  ;;  %v2052_v37 = vpop.eup %2051  ;;  %vm1133_vm9 = vcmp.eq.f32.partialorder %v2701_v30, inf }
 0x132   : > { %v2788_v27 = vadd.f32 1e-10, %v1123_v2  ;;  %v1130_v11 = vsel %vm1128_vm8, %v1129_v1, %v1127_v18  ;;  %vm1135_vm10 = vcmp.eq.f32.partialorder %v2701_v30, 0.0  ;;  %v1136_v16 = vand.u32 2147483648, %v2701_v30 }
 0x133   : > { %v2792_v6 = vadd.f32 1e-10, %v1130_v11  ;;  %v1134_v15 = vsel %vm1133_vm9, %v2701_v30, %v1132_v29  ;;  %v1167_v32 = vmul.f32 %v2048_v54, %v2724_v10  ;;  %vm1168_vm11 = vcmp.eq.f32.partialorder %v2724_v10, inf  ;;  %v2801_v8 = vpop.eup %2053 }
 0x134   : > { %2065 = vrcp.f32 %v2788_v27  ;;  %vm1170_vm12 = vcmp.eq.f32.partialorder %v2724_v10, 0.0  ;;  %v1171_v9 = vand.u32 2147483648, %v2724_v10  ;;  %v1137_v36 = vsel %vm1135_vm10, %v1136_v16, %v1134_v15 }
 0x135   : > { %2067 = vrcp.f32 %v2792_v6  ;;  %v1169_v23 = vsel %vm1168_vm11, %v2724_v10, %v1167_v32  ;;  %v1139_v30 = vmul.f32 %v2727_v28, %v2699_v62  ;;  %v2807_v34 = vadd.f32 1e-10, %v1137_v36 }
 0x136   : > { %v2056_v22 = vpop.eup %2055  ;;  %v1172_v35 = vsel %vm1170_vm12, %v1171_v9, %v1169_v23  ;;  %vm1140_vm13 = vcmp.eq.f32.partialorder %v2699_v62, inf  ;;  %vm1142_vm14 = vcmp.eq.f32.partialorder %v2699_v62, 0.0  ;;  %v1143_v41 = vand.u32 2147483648, %v2699_v62 }
 0x137   : > { %v2058_v49 = vpop.eup %2057  ;;  %v1248_v44 = vmul.f32 %v2056_v22, %v1216_v38  ;;  %v2811_v5 = vadd.f32 1e-10, %v1172_v35  ;;  %v1141_v52 = vsel %vm1140_vm13, %v2699_v62, %v1139_v30  ;;  %2069 = vrcp.f32 %v2807_v34  ;;  %v1296_v62 = vld [vmem:[%s3212_s1 + $0x2] sm:$0x3] }
 0x138   : > { %v2815_v10 = vpop.eup %2059  ;;  %v1181_v28 = vmul.f32 %v2052_v37, %v2737_v61  ;;  %vm1182_vm15 = vcmp.eq.f32.partialorder %v2737_v61, inf  ;;  %vm1184_vm0 = vcmp.eq.f32.partialorder %v2737_v61, 0.0  ;;  %v1144_v38 = vsel %vm1142_vm14, %v1143_v41, %v1141_v52 }
 0x139   : > { %v2062_v54 = vpop.eup %2061  ;;  %v1264_v47 = vsub.f32 2.0, %v1248_v44  ;;  %2071 = vrcp.f32 %v2811_v5  ;;  %v1185_v51 = vand.u32 2147483648, %v2737_v61  ;;  %v2826_v59 = vadd.f32 1e-10, %v1144_v38 }
 0x13a   : > { %v2064_v50 = vpop.eup %2063  ;;  %v1183_v33 = vsel %vm1182_vm15, %v2737_v61, %v1181_v28  ;;  %v1146_v1 = vmul.f32 %v2758_v40, %v2714_v7  ;;  %vm1147_vm1 = vcmp.eq.f32.partialorder %v2714_v7, inf  ;;  %vm1149_vm2 = vcmp.eq.f32.partialorder %v2714_v7, 0.0 }
 0x13b   : > { %v1280_v2 = vmul.f32 %v2056_v22, %v1264_v47  ;;  %v1247_v18 = vmul.f32 %v2064_v50, %v1215_v57  ;;  %v1186_v29 = vsel %vm1184_vm0, %v1185_v51, %v1183_v33  ;;  %2073 = vrcp.f32 %v2826_v59  ;;  %v1295_v57 = vld [vmem:[%s3212_s1] sm:$0x3] }
 0x13c   : > { %v2834_v37 = vadd.f32 1e-10, %v1186_v29  ;;  %v1148_v11 = vsel %vm1147_vm1, %v2714_v7, %v1146_v1  ;;  %v1150_v15 = vand.u32 2147483648, %v2714_v7  ;;  %v1195_v40 = vmul.f32 %v2058_v49, %v2753_v25 }
 0x13d   : > { %v2838_v16 = vmul.f32 %v1296_v62, %v1280_v2  ;;  %v1263_v61 = vsub.f32 2.0, %v1247_v18  ;;  %vm1196_vm3 = vcmp.eq.f32.partialorder %v2753_v25, inf  ;;  %vm1198_vm4 = vcmp.eq.f32.partialorder %v2753_v25, 0.0 }
 0x13e   : > { %v2066_v32 = vpop.eup %2065  ;;  %2075 = vrcp.f32 %v2834_v37  ;;  %v1151_v9 = vsel %vm1149_vm2, %v1150_v15, %v1148_v11  ;;  %v1199_v36 = vand.u32 2147483648, %v2753_v25  ;;  %v1197_v35 = vsel %vm1196_vm3, %v2753_v25, %v1195_v40  ;;  %v1297_v25 = vld [vmem:[%s3212_s1 + $0x4] sm:$0x3]  ;;  %v1304_v40 = vld [vmem:[%s3212_s1 + $0x12] sm:$0x3] }
 0x13f   : > { %v2068_v7 = vpop.eup %2067  ;;  %1381 = vperm.xlu1 %2030, %v2838_v16   ;;  %v1279_v23 = vmul.f32 %v2064_v50, %v1263_v61  ;;  %v1249_v30 = vmul.f32 %v2066_v32, %v2788_v27  ;;  %v2850_v22 = vadd.f32 1e-10, %v1151_v9  ;;  %v1153_v52 = vmul.f32 %v2739_v14, %v2708_v19 }
 0x140   : > { %v1250_v49 = vmul.f32 %v2068_v7, %v2792_v6  ;;  %v1200_v44 = vsel %vm1198_vm4, %v1199_v36, %v1197_v35  ;;  %vm1154_vm5 = vcmp.eq.f32.partialorder %v2708_v19, inf  ;;  %vm1156_vm6 = vcmp.eq.f32.partialorder %v2708_v19, 0.0  ;;  %v1299_v35 = vld [vmem:[%s3212_s1 + $0x8] sm:$0x3] }
 0x141   : > { %v2857_v41 = vmul.f32 %v1295_v57, %v1279_v23  ;;  %v1265_v28 = vsub.f32 2.0, %v1249_v30  ;;  %2077 = vrcp.f32 %v2850_v22  ;;  %v2860_v47 = vadd.f32 1e-10, %v1200_v44  ;;  %v2070_v27 = vpop.eup %2069 }
 0x142   : > { %v1266_v38 = vsub.f32 2.0, %v1250_v49  ;;  %v1155_v6 = vsel %vm1154_vm5, %v2708_v19, %v1153_v52  ;;  %v1157_v14 = vand.u32 2147483648, %v2708_v19  ;;  %v1251_v62 = vmul.f32 %v2070_v27, %v2807_v34  ;;  %v1298_v19 = vld [vmem:[%s3212_s1 + $0x6] sm:$0x3] }
 0x143   : > { %v2072_v51 = vpop.eup %2071  ;;  %1377 = vperm.xlu0 %2029, %v2857_v41   ;;  %v1281_v50 = vmul.f32 %v2066_v32, %v1265_v28  ;;  %2079 = vrcp.f32 %v2860_v47  ;;  %v1209_v33 = vmul.f32 %v2062_v54, %v2768_v48  ;;  %vm1210_vm7 = vcmp.eq.f32.partialorder %v2768_v48, inf }
 0x144   : > { %v1282_v1 = vmul.f32 %v2068_v7, %v1266_v38  ;;  %v1256_v2 = vmul.f32 %v2072_v51, %v2811_v5  ;;  %v1158_v18 = vsel %vm1156_vm6, %v1157_v14, %v1155_v6  ;;  %v1267_v11 = vsub.f32 2.0, %v1251_v62  ;;  %v1306_v38 = vld [vmem:[%s3212_s1 + $0x16] sm:$0x3] }
 0x145   : > { %v2874_v29 = vmul.f32 %v1297_v25, %v1281_v50  ;;  %v2879_v15 = vadd.f32 1e-10, %v1158_v18  ;;  %v1211_v34 = vsel %vm1210_vm7, %v2768_v48, %v1209_v33  ;;  %v2074_v61 = vpop.eup %2073  ;;  %2081 = vrsqrt.f32 %v2780_v31 }
 0x146   : > { %v1272_v54 = vsub.f32 2.0, %v1256_v2  ;;  %v1213_v5 = vand.u32 2147483648, %v2768_v48  ;;  %v1252_v32 = vmul.f32 %v2074_v61, %v2826_v59  ;;  %vm1212_vm8 = vcmp.eq.f32.partialorder %v2768_v48, 0.0 }
 0x147   : > { %1385 = vperm.xlu1 %2030, %v2874_v29   ;;  %2083 = vrcp.f32 %v2879_v15  ;;  %v1160_v57 = vmul.f32 %v2773_v58, %v2730_v56  ;;  %v2893_v36 = vmul.f32 %v1298_v19, %v1282_v1  ;;  %v1283_v7 = vmul.f32 %v2070_v27, %v1267_v11 }
 0x148   : > { %v2076_v9 = vpop.eup %2075  ;;  %v1288_v23 = vmul.f32 %v2072_v51, %v1272_v54  ;;  %v1214_v30 = vsel %vm1212_vm8, %v1213_v5, %v1211_v34  ;;  %v1268_v49 = vsub.f32 2.0, %v1252_v32  ;;  %vm1161_vm9 = vcmp.eq.f32.partialorder %v2730_v56, inf }
 0x149   : > { %v1258_v59 = vmul.f32 %v2076_v9, %v2834_v37  ;;  %v1230_v44 = vadd.f32 1e-10, %v1214_v30  ;;  %v1162_v58 = vsel %vm1161_vm9, %v2730_v56, %v1160_v57  ;;  %v1164_v52 = vand.u32 2147483648, %v2730_v56 }
 0x14a   : > { %v2900_v48 = vmul.f32 %v1304_v40, %v1288_v23  ;;  %vm1163_vm10 = vcmp.eq.f32.partialorder %v2730_v56, 0.0  ;;  %v1174_v25 = vmul.f32 %v2801_v8, %v2744_v0  ;;  %v2908_v37 = vmul.f32 %v1299_v35, %v1283_v7  ;;  %v1300_v8 = vld [vmem:[%s3212_s1 + $0xa] sm:$0x3]  ;;  %v1308_v40 = vld [vmem:[%s3212_s1 + $0x1a] sm:$0x3] }
 0x14b   : > { %v2078_v28 = vpop.eup %2077  ;;  %1389 = vperm.xlu1 %2030, %v2893_v36   ;;  %v1274_v27 = vsub.f32 2.0, %v1258_v59  ;;  %2085 = vrcp.f32 %v1230_v44  ;;  %v1165_v14 = vsel %vm1163_vm10, %v1164_v52, %v1162_v58  ;;  %vm1175_vm11 = vcmp.eq.f32.partialorder %v2744_v0, inf }
 0x14c   : > { %1413 = vperm.xlu0 %2029, %v2900_v48   ;;  %v1253_v6 = vmul.f32 %v2078_v28, %v2850_v22  ;;  %v1284_v50 = vmul.f32 %v2074_v61, %v1268_v49  ;;  %v1223_v56 = vadd.f32 1e-10, %v1165_v14  ;;  %v1176_v33 = vsel %vm1175_vm11, %v2744_v0, %v1174_v25 }
 0x14d   : > { %v2080_v51 = vpop.eup %2079  ;;  %v1290_v62 = vmul.f32 %v2076_v9, %v1274_v27  ;;  %v1178_v18 = vand.u32 2147483648, %v2744_v0  ;;  %vm1177_vm12 = vcmp.eq.f32.partialorder %v2744_v0, 0.0  ;;  %v1188_v19 = vmul.f32 %v2815_v10, %v2763_v39  ;;  %v1301_v10 = vld [vmem:[%s3212_s1 + $0xc] sm:$0x3] }
 0x14e   : > { %v1269_v1 = vsub.f32 2.0, %v1253_v6  ;;  %v1260_v2 = vmul.f32 %v2080_v51, %v2860_v47  ;;  %2087 = vrcp.f32 %v1223_v56  ;;  %vm1189_vm13 = vcmp.eq.f32.partialorder %v2763_v39, inf }
 0x14f   : > { %1393 = vperm.xlu1 %2030, %v2908_v37   ;;  %v2923_v22 = vmul.f32 %v1306_v38, %v1290_v62  ;;  %v2082_v11 = vpop.eup %2081  ;;  %v1179_v61 = vsel %vm1177_vm12, %v1178_v18, %v1176_v33  ;;  %v2929_v5 = vmul.f32 %v1300_v8, %v1284_v50  ;;  %v1190_v0 = vsel %vm1189_vm13, %v2763_v39, %v1188_v19  ;;  %v1310_v62 = vld [vmem:[%s3212_s1 + $0x1e] sm:$0x3]  ;;  %v1303_v18 = vld [vmem:[%s3212_s1 + $0x10] sm:$0x3]  ;;  %v1312_v19 = vld [vmem:[%s3213_s2 + $0x2] sm:$0x3] }
 0x150   : > { %v1276_v34 = vsub.f32 2.0, %v1260_v2  ;;  %v1285_v47 = vmul.f32 %v2078_v28, %v1269_v1  ;;  %v1225_v32 = vadd.f32 1e-10, %v1179_v61  ;;  %v1192_v7 = vand.u32 2147483648, %v2763_v39 }
 0x151   : > { %v2084_v54 = vpop.eup %2083  ;;  %1421 = vperm.xlu0 %2029, %v2923_v22   ;;  %vm1191_vm14 = vcmp.eq.f32.partialorder %v2763_v39, 0.0  ;;  %v1202_v23 = vmul.f32 %v2082_v11, %v2780_v31  ;;  %vm1203_vm15 = vcmp.eq.f32.partialorder %v2780_v31, inf  ;;  %v1206_v28 = vand.u32 2147483648, %v2780_v31  ;;  %v1302_v39 = vld [vmem:[%s3212_s1 + $0xe] sm:$0x3] }
 0x152   : > { %v1292_v57 = vmul.f32 %v2080_v51, %v1276_v34  ;;  %v1254_v9 = vmul.f32 %v2084_v54, %v2879_v15  ;;  %2089 = vrcp.f32 %v1225_v32  ;;  %v1193_v49 = vsel %vm1191_vm14, %v1192_v7, %v1190_v0 }
 0x153   : > { %1397 = vperm.xlu1 %2030, %v2929_v5   ;;  %v2947_v58 = vmul.f32 %v1301_v10, %v1285_v47  ;;  %v1227_v52 = vadd.f32 1e-10, %v1193_v49  ;;  %v1204_v15 = vsel %vm1203_vm15, %v2780_v31, %v1202_v23  ;;  %vm1205_vm0 = vcmp.eq.f32.partialorder %v2780_v31, 0.0  ;;  %v1305_v47 = vld [vmem:[%s3212_s1 + $0x14] sm:$0x3] }
 0x154   : > { %v2944_v30 = vmul.f32 %v1308_v40, %v1292_v57  ;;  %v1270_v35 = vsub.f32 2.0, %v1254_v9  ;;  %v1207_v38 = vsel %vm1205_vm0, %v1206_v28, %v1204_v15  ;;  %v1344_v31 = vmul.f32 %v2838_v16, %v2600_v12  ;;  %v1314_v40 = vld [vmem:[%s3213_s2 + $0x6] sm:$0x3]  ;;  %v1316_v23 = vld [vmem:[%s3213_s2 + $0xa] sm:$0x3] }
 0x155   : > { %v2086_v59 = vpop.eup %2085  ;;  %2091 = vrcp.f32 %v1227_v52  ;;  %v1229_v14 = vadd.f32 1e-10, %v1207_v38  ;;  %v1346_v12 = vmul.f32 %v2893_v36, %v2593_v21  ;;  %v1348_v21 = vmul.f32 %v2929_v5, %v2604_v42  ;;  %v1307_v36 = vld [vmem:[%s3212_s1 + $0x18] sm:$0x3]  ;;  %v1309_v42 = vld [vmem:[%s3212_s1 + $0x1c] sm:$0x3] }
 0x156   : > { %1429 = vperm.xlu0 %2029, %v2944_v30   ;;  %v1286_v27 = vmul.f32 %v2084_v54, %v1270_v35  ;;  %v1262_v25 = vmul.f32 %v2086_v59, %v1230_v44  ;;  %v1360_v61 = vsub.f32 %v1312_v19, %v1344_v31  ;;  %v1318_v5 = vld [vmem:[%s3213_s2 + $0xe] sm:$0x3]  ;;  %v1343_v38 = vmul.f32 %v2857_v41, %v2585_v63  ;;  %v1322_v41 = vld [vmem:[%s3213_s2 + $0x16] sm:$0x3] }
 0x157   : > { %1401 = vperm.xlu1 %2030, %v2947_v58   ;;  %2093 = vrcp.f32 %v1229_v14  ;;  %v1362_v9 = vsub.f32 %v1314_v40, %v1346_v12  ;;  %v1364_v15 = vsub.f32 %v1316_v23, %v1348_v21  ;;  %v1354_v63 = vmul.f32 %v2923_v22, %v2641_v46  ;;  %v1315_v46 = vld [vmem:[%s3213_s2 + $0x8] sm:$0x3] }
 0x158   : > { %v1278_v6 = vsub.f32 2.0, %v1262_v25  ;;  %v2088_v51 = vpop.eup %2087  ;;  %v1334_v50 = vmul.f32 %v1302_v39, %v1286_v27  ;;  %v1349_v31 = vmul.f32 %v2947_v58, %v2624_v4  ;;  %v1319_v4 = vld [vmem:[%s3213_s2 + $0x10] sm:$0x3] }
 0x159   : > { %v1255_v8 = vmul.f32 %v2088_v51, %v1223_v56 }
 0x15a   : > { %v1294_v33 = vmul.f32 %v2086_v59, %v1278_v6  ;;  %v1350_v28 = vmul.f32 %v1334_v50, %v2617_v13  ;;  %v1352_v6 = vmul.f32 %v2900_v48, %v2628_v24  ;;  %v1311_v13 = vld [vmem:[%s3213_s2] sm:$0x3]  ;;  %v1313_v24 = vld [vmem:[%s3213_s2 + $0x4] sm:$0x3] }
 0x15b   : > { %1405 = vperm.xlu1 %2030, %v1334_v50   ;;  %v1271_v44 = vsub.f32 2.0, %v1255_v8  ;;  %v1347_v8 = vmul.f32 %v2908_v37, %v2606_v43  ;;  %v1326_v37 = vld [vmem:[%s3213_s2 + $0x1e] sm:$0x3] }
 0x15c   : > { %v2960_v1 = vmul.f32 %v1310_v62, %v1294_v33  ;;  %v2090_v2 = vpop.eup %2089  ;;  %v1366_v25 = vsub.f32 %v1318_v5, %v1350_v28  ;;  %v1345_v62 = vmul.f32 %v2874_v29, %v2583_v60  ;;  %v1370_v33 = vsub.f32 %v1322_v41, %v1354_v63  ;;  %v1324_v29 = vld [vmem:[%s3213_s2 + $0x1a] sm:$0x3] }
 0x15d   : > { %v1287_v56 = vmul.f32 %v2088_v51, %v1271_v44  ;;  %v1257_v11 = vmul.f32 %v2090_v2, %v1225_v32  ;;  %v1359_v51 = vsub.f32 %v1311_v13, %v1343_v38  ;;  %v1356_v60 = vmul.f32 %v2944_v30, %v2652_v17  ;;  %v1317_v17 = vld [vmem:[%s3213_s2 + $0xc] sm:$0x3] }
 0x15e   : > { %1437 = vperm.xlu0 %2029, %v2960_v1   ;;  %v1361_v48 = vsub.f32 %v1313_v24, %v1345_v62  ;;  %v1363_v22 = vsub.f32 %v1315_v46, %v1347_v8  ;;  %v1358_v43 = vmul.f32 %v2960_v1, %v2665_v45  ;;  %v1365_v30 = vsub.f32 %v1317_v17, %v1349_v31  ;;  %v1321_v1 = vld [vmem:[%s3213_s2 + $0x14] sm:$0x3]  ;;  %v2098_v46 = vld [vmem:[%s2372_s21 + $0x1c] sm:$0xf]  ;;  %v2099_v31 = vld [vmem:[%s2372_s21] sm:$0xf] }
 0x15f   : > { %v2971_v34 = vmul.f32 %v1303_v18, %v1287_v56  ;;  %v1273_v54 = vsub.f32 2.0, %v1257_v11  ;;  %v2092_v16 = vpop.eup %2091  ;;  %v1372_v44 = vsub.f32 %v1324_v29, %v1356_v60 }
 0x160   : > { %v1259_v0 = vmul.f32 %v2092_v16, %v1227_v52 }
 0x161   : > { %1409 = vperm.xlu1 %2030, %v2971_v34   ;;  %v1289_v32 = vmul.f32 %v2090_v2, %v1273_v54  ;;  %v2094_v10 = vpop.eup %2093  ;;  %v1374_v2 = vsub.f32 %v1326_v37, %v1358_v43  ;;  %v1351_v18 = vmul.f32 %v2971_v34, %v2630_v26  ;;  %v1323_v26 = vld [vmem:[%s3213_s2 + $0x18] sm:$0x3] }
 0x162   : > { %1589 = vperm.xlu0 %2029, %v1360_v61   ;;  %v1275_v7 = vsub.f32 2.0, %v1259_v0  ;;  %v1261_v35 = vmul.f32 %v2094_v10, %v1229_v14  ;;  %v1320_v14 = vld [vmem:[%s3213_s2 + $0x12] sm:$0x3]  ;;  %v2230_v0 = vmov 269488144  }
 0x163   : > { %v1337_v57 = vmul.f32 %v1305_v47, %v1289_v32  ;;  %v1368_v50 = vsub.f32 %v1320_v14, %v1352_v6  ;;  %v1367_v45 = vsub.f32 %v1319_v4, %v1351_v18 }
 0x164   : > { %v1291_v49 = vmul.f32 %v2092_v16, %v1275_v7  ;;  %v1277_v59 = vsub.f32 2.0, %v1261_v35 }
 0x165   : > { %1417 = vperm.xlu1 %2030, %v1337_v57   ;;  %v1353_v58 = vmul.f32 %v1337_v57, %v2648_v55  ;;  %v1325_v55 = vld [vmem:[%s3213_s2 + $0x1c] sm:$0x3] }
 0x166   : > { %1597 = vperm.xlu0 %2029, %v1362_v9   ;;  %v1339_v52 = vmul.f32 %v1307_v36, %v1291_v49  ;;  %v1293_v27 = vmul.f32 %v2094_v10, %v1277_v59 }
 0x167   : > { %v1369_v19 = vsub.f32 %v1321_v1, %v1353_v58 }
 0x168   : > { %v1341_v39 = vmul.f32 %v1309_v42, %v1293_v27  ;;  %v1355_v56 = vmul.f32 %v1339_v52, %v2654_v20 }
 0x169   : > { %1425 = vperm.xlu1 %2030, %v1339_v52   ;;  %v2095_v52 = vld [vmem:[%s2372_s21 + $0x4] sm:$0xf] }
 0x16a   : > { %1605 = vperm.xlu0 %2029, %v1364_v15   ;;  %v1371_v11 = vsub.f32 %v1323_v26, %v1355_v56  ;;  %v1357_v34 = vmul.f32 %v1341_v39, %v2672_v53  ;;  %v1440_v53 = vunpack.c.l.s4 %v2230_v0  ;;  %v2101_v56 = vld [vmem:[%s2372_s21 + $0x8] sm:$0xf] }
 0x16c   : > { %v1373_v61 = vsub.f32 %v1325_v55, %v1357_v34  ;;  %v1441_v57 = vunpack.c.0.s8 %v1440_v53 }
 0x16d   : > { %1433 = vperm.xlu1 %2030, %v1341_v39   ;;  %v2096_v39 = vld [vmem:[%s2372_s21 + $0xc] sm:$0xf] }
 0x16e   : > { %1613 = vperm.xlu0 %2029, %v1366_v25   ;;  %v3065_v21 = vsub.s32 %v1441_v57, %v2378_v3 }
 0x171   : > { %1585 = vperm.xlu1 %2030, %v1359_v51  }
 0x172   : > { %1621 = vperm.xlu0 %2029, %v1368_v50   ;;  %v2097_v50 = vld [vmem:[%s2372_s21 + $0x14] sm:$0xf] }
 0x175   : > { %1593 = vperm.xlu1 %2030, %v1361_v48  }
 0x176   : > { %1629 = vperm.xlu0 %2029, %v1370_v33  }
 0x179   : > { %1601 = vperm.xlu1 %2030, %v1363_v22  }
 0x17a   : > { %1637 = vperm.xlu0 %2029, %v1372_v44  }
 0x17d   : > { %1609 = vperm.xlu1 %2030, %v1365_v30  }
 0x17e   : > { %1645 = vperm.xlu0 %2029, %v1374_v2   ;;  %v2100_v2 = vld [vmem:[%s2372_s21 + $0x24] sm:$0xf] }
 0x181   : > { %1617 = vperm.xlu1 %2030, %v1367_v45  }
 0x185   : > { %1625 = vperm.xlu1 %2030, %v1369_v19  }
 0x189   : > { %1633 = vperm.xlu1 %2030, %v1371_v11  }
 0x18d   : > { %1641 = vperm.xlu1 %2030, %v1373_v61   ;;  %v2102_v61 = vld [vmem:[%s2372_s21 + $0x2c] sm:$0xf] }
 0x1be   : > { %v1382_v54 = vpop.permute.xlu1 %1381 }
 0x1bf   : > { %v1452_v35 = vrot.slane %v1382_v54, %v3065_v21 }
 0x1c1   : > { %v1568_v15 = vmul.f32 %v2095_v52, %v1452_v35 }
 0x1c2   : > { %v1378_v16 = vpop.permute.xlu0 %1377 }
 0x1c3   : > { %v1445_v48 = vrot.slane %v1378_v16, %v3065_v21 }
 0x1c5   : > { %v1567_v43 = vmul.f32 %v2099_v31, %v1445_v48 }
 0x1c6   : > { %v3054_v12 = vpop.permute.xlu1 %1385 }
 0x1c7   : > { %v1459_v17 = vrot.slane %v3054_v12, %v3065_v21 }
 0x1c9   : > { %v1569_v26 = vmul.f32 %v2101_v56, %v1459_v17 }
 0x1ca   : > { %v1390_v20 = vpop.permute.xlu1 %1389 }
 0x1cb   : > { %v1414_v47 = vpop.permute.xlu0 %1413  ;;  %v1466_v28 = vrot.slane %v1390_v20, %v3065_v21 }
 0x1cc   : > { %v1508_v60 = vrot.slane %v1414_v47, %v3065_v21 }
 0x1cd   : > { %v1570_v25 = vmul.f32 %v2096_v39, %v1466_v28 }
 0x1ce   : > { %v3056_v40 = vpop.permute.xlu1 %1393  ;;  %v1576_v18 = vmul.f32 %v2100_v2, %v1508_v60 }
 0x1cf   : > { %v1473_v11 = vrot.slane %v3056_v40, %v3065_v21  ;;  %v2103_v40 = vld [vmem:[%s2372_s21 + $0x10] sm:$0xf] }
 0x1d0   : > { %v3058_v32 = vpop.permute.xlu0 %1421 }
 0x1d1   : > { %v1522_v4 = vrot.slane %v3058_v32, %v3065_v21  ;;  %v1571_v0 = vmul.f32 %v2103_v40, %v1473_v11 }
 0x1d2   : > { %v1398_v10 = vpop.permute.xlu1 %1397 }
 0x1d3   : > { %v1480_v38 = vrot.slane %v1398_v10, %v3065_v21  ;;  %v1578_v54 = vmul.f32 %v2102_v61, %v1522_v4 }
 0x1d5   : > { %v3062_v7 = vpop.permute.xlu0 %1429  ;;  %v1572_v62 = vmul.f32 %v2097_v50, %v1480_v38 }
 0x1d6   : > { %v3060_v9 = vpop.permute.xlu1 %1401  ;;  %v1536_v12 = vrot.slane %v3062_v7, %v3065_v21 }
 0x1d7   : > { %v1487_v53 = vrot.slane %v3060_v9, %v3065_v21  ;;  %v2105_v9 = vld [vmem:[%s2372_s21 + $0x18] sm:$0xf] }
 0x1da   : > { %v1406_v36 = vpop.permute.xlu1 %1405 }
 0x1db   : > { %v1494_v63 = vrot.slane %v1406_v36, %v3065_v21  ;;  %v2104_v36 = vld [vmem:[%s2372_s21 + $0x34] sm:$0xf] }
 0x1dc   : > { %v1580_v7 = vmul.f32 %v2104_v36, %v1536_v12 }
 0x1dd   : > { %v3067_v23 = vpop.permute.xlu0 %1437  ;;  %v1574_v29 = vmul.f32 %v2098_v46, %v1494_v63 }
 0x1de   : > { %v1550_v35 = vrot.slane %v3067_v23, %v3065_v21  ;;  %v2106_v23 = vld [vmem:[%s2372_s21 + $0x3c] sm:$0xf] }
 0x1e0   : > { %v3070_v49 = vpop.permute.xlu1 %1409 }
 0x1e1   : > { %v1590_v59 = vpop.permute.xlu0 %1589  ;;  %v1501_v39 = vrot.slane %v3070_v49, %v3065_v21 }
 0x1e2   : > { %v1660_v27 = vrot.slane %v1590_v59, %v3065_v21 }
 0x1e4   : > { %v1776_v42 = vadd.f32 %v1660_v27, %v1568_v15  ;;  %v3075_v5 = vpop.permute.xlu1 %1417  ;;  %v1573_v27 = vmul.f32 %v2105_v9, %v1487_v53 }
 0x1e5   : > { %v1598_v3 = vpop.permute.xlu0 %1597 }
 0x1e6   : > { %1792 = vst [vmem:[%s3081_s29 + $0x4] sm:$0xf] %v1776_v42  ;;  %v1674_v6 = vrot.slane %v1598_v3, %v3065_v21 }
 0x1e8   : > { %v1778_v13 = vadd.f32 %v1674_v6, %v1570_v25  ;;  %v3085_v14 = vpop.permute.xlu1 %1425  ;;  %v1582_v25 = vmul.f32 %v2106_v23, %v1550_v35 }
 0x1e9   : > { %v1606_v51 = vpop.permute.xlu0 %1605  ;;  %v1529_v46 = vrot.slane %v3085_v14, %v3065_v21 }
 0x1ea   : > { %1794 = vst [vmem:[%s3081_s29 + $0xc] sm:$0xf] %v1778_v13  ;;  %v1688_v24 = vrot.slane %v1606_v51, %v3065_v21 }
 0x1ec   : > { %v1780_v41 = vadd.f32 %v1688_v24, %v1572_v62  ;;  %v3092_v33 = vpop.permute.xlu1 %1433  ;;  %v2107_v62 = vld [vmem:[%s2372_s21 + $0x20] sm:$0xf]  ;;  %v1515_v24 = vrot.slane %v3075_v5, %v3065_v21 }
 0x1ed   : > { %v1614_v8 = vpop.permute.xlu0 %1613  ;;  %v1575_v63 = vmul.f32 %v2107_v62, %v1501_v39 }
 0x1ee   : > { %1796 = vst [vmem:[%s3081_s29 + $0x14] sm:$0xf] %v1780_v41  ;;  %v1702_v22 = vrot.slane %v1614_v8, %v3065_v21  ;;  %v2108_v8 = vld [vmem:[%s2372_s21 + $0x28] sm:$0xf] }
 0x1ef   : > { %v1577_v60 = vmul.f32 %v2108_v8, %v1515_v24 }
 0x1f0   : > { %v1782_v44 = vadd.f32 %v1702_v22, %v1574_v29  ;;  %v1586_v37 = vpop.permute.xlu1 %1585 }
 0x1f1   : > { %v1622_v30 = vpop.permute.xlu0 %1621  ;;  %v1653_v45 = vrot.slane %v1586_v37, %v3065_v21 }
 0x1f2   : > { %1798 = vst [vmem:[%s3081_s29 + $0x1c] sm:$0xf] %v1782_v44  ;;  %v1716_v58 = vrot.slane %v1622_v30, %v3065_v21  ;;  %v2109_v44 = vld [vmem:[%s2372_s21 + $0x30] sm:$0xf]  ;;  %v2110_v30 = vld [vmem:[%s2372_s21 + $0x38] sm:$0xf] }
 0x1f3   : > { %v1775_v1 = vadd.f32 %v1653_v45, %v1567_v43  ;;  %v1579_v31 = vmul.f32 %v2109_v44, %v1529_v46  ;;  %v1543_v43 = vrot.slane %v3092_v33, %v3065_v21  ;;  %s2231_s21 = smov [#allocation5]  }
 0x1f4   : > { %v1784_v19 = vadd.f32 %v1716_v58, %v1576_v18  ;;  %v1594_v34 = vpop.permute.xlu1 %1593  ;;  %s2145_s24 = sshll.u32 %s2231_s21, 4  ;;  %s2146_s24 = int_to_ptr.vmem [resolvable:$false] %s2145_s24 }
 0x1f5   : > { %v1630_v55 = vpop.permute.xlu0 %1629  ;;  %1791 = vst [vmem:[%s3081_s29] sm:$0xf] %v1775_v1  ;;  %v1667_v16 = vrot.slane %v1594_v34, %v3065_v21  ;;  %v1581_v2 = vmul.f32 %v2110_v30, %v1543_v43  ;;  %s2147_s6 = scalar_lea.vmem %s2146_s24, 2048  ;;  %p2148_p6 = scmp.lt.s32.totalorder %s3161_s30, %s2146_s24 }
 0x1f6   : > { %1800 = vst [vmem:[%s3081_s29 + $0x24] sm:$0xf] %v1784_v19  ;;  %v1730_v20 = vrot.slane %v1630_v55, %v3065_v21  ;;  %p2149_p13 = scmp.lt.s32.totalorder %s2147_s6, %s2141_s19 }
 0x1f7   : > { %v1777_v47 = vadd.f32 %v1667_v16, %v1569_v26 }
 0x1f8   : > { %v1786_v32 = vadd.f32 %v1730_v20, %v1578_v54  ;;  %v1602_v10 = vpop.permute.xlu1 %1601  ;;  %p2150_p2 = por %p2149_p13, %p2148_p6 }
 0x1f9   : > { %v1638_v57 = vpop.permute.xlu0 %1637  ;;  %1793 = vst [vmem:[%s3081_s29 + $0x8] sm:$0xf] %v1777_v47  ;;  %v1681_v59 = vrot.slane %v1602_v10, %v3065_v21 }
 0x1fa   : > { %1802 = vst [vmem:[%s3081_s29 + $0x2c] sm:$0xf] %v1786_v32  ;;  %v1744_v52 = vrot.slane %v1638_v57, %v3065_v21  ;;  %p2151_p5 = pnand %p2150_p2, %p2144_p0 }
 0x1fb   : > { %v1779_v15 = vadd.f32 %v1681_v59, %v1571_v0 }
 0x1fc   : > { %v1788_v28 = vadd.f32 %v1744_v52, %v1580_v7  ;;  %v1610_v42 = vpop.permute.xlu1 %1609 }
 0x1fd   : > { %v1646_v3 = vpop.permute.xlu0 %1645  ;;  %1795 = vst [vmem:[%s3081_s29 + $0x10] sm:$0xf] %v1779_v15  ;;  %v1695_v38 = vrot.slane %v1610_v42, %v3065_v21 }
 0x1fe   : > { %1804 = vst [vmem:[%s3081_s29 + $0x34] sm:$0xf] %v1788_v28  ;;  %v1758_v6 = vrot.slane %v1646_v3, %v3065_v21 }
 0x1ff   : > { %v1781_v13 = vadd.f32 %v1695_v38, %v1573_v27 }
 0x200   : > { %v1790_v51 = vadd.f32 %v1758_v6, %v1582_v25  ;;  %v1618_v50 = vpop.permute.xlu1 %1617 }
 0x201   : > { %1797 = vst [vmem:[%s3081_s29 + $0x18] sm:$0xf] %v1781_v13  ;;  %v1709_v49 = vrot.slane %v1618_v50, %v3065_v21 }
 0x202   : > { %1806 = vst [vmem:[%s3081_s29 + $0x3c] sm:$0xf] %v1790_v51 }
 0x203   : > { %v1783_v41 = vadd.f32 %v1709_v49, %v1575_v63 }
 0x204   : > { %v1626_v48 = vpop.permute.xlu1 %1625 }
 0x205   : > { %1799 = vst [vmem:[%s3081_s29 + $0x20] sm:$0xf] %v1783_v41  ;;  %v1723_v29 = vrot.slane %v1626_v48, %v3065_v21 }
 0x207   : > { %v1785_v5 = vadd.f32 %v1723_v29, %v1577_v60 }
 0x208   : > { %v1634_v22 = vpop.permute.xlu1 %1633 }
 0x209   : > { %1801 = vst [vmem:[%s3081_s29 + $0x28] sm:$0xf] %v1785_v5  ;;  %v1737_v17 = vrot.slane %v1634_v22, %v3065_v21 }
 0x20b   : > { %v1787_v37 = vadd.f32 %v1737_v17, %v1579_v31 }
 0x20c   : > { %v1642_v14 = vpop.permute.xlu1 %1641 }
 0x20d   : > { %1803 = vst [vmem:[%s3081_s29 + $0x30] sm:$0xf] %v1787_v37  ;;  %v1751_v18 = vrot.slane %v1642_v14, %v3065_v21 }
 0x20f   : > { %v1789_v33 = vadd.f32 %v1751_v18, %v1581_v2 }
 0x211   : > { %1805 = vst [vmem:[%s3081_s29 + $0x38] sm:$0xf] %v1789_v33 }
 0x212   : > { %2154 = shalt.err (!%p2151_p5)
}
 0x213   : > { %s2155_s8 = scalar_lea.hbm %s3159_s7, 1024  ;;  %s2159_s22 = scalar_lea.hbm %s3214_s3, 2048 }
 0x214   : > { %p2156_p4 = scmp.ne.s32.totalorder %s3159_s7, %s2155_s8  ;;  %p2160_p12 = scmp.lt.u32.totalorder %s3159_s7, %s3214_s3 }
 0x215   : > { %p2161_p1 = scmp.lt.u32.totalorder %s2159_s22, %s2155_s8  ;;  %p2163_p8 = scmp.lt.u32.totalorder %s2155_s8, %s3159_s7 }
 0x216   : > { %p2157_p7 = pnand %p2156_p4, %p3222_p9 }
 0x217   : > { %p2162_p3 = por %p2161_p1, %p2160_p12 }
 0x218   : > { %p2158_p10 = pneg %p2157_p7 }
 0x219   : > { %p2164_p11 = por %p2163_p8, %p2162_p3 }
 0x21b   : > { %p2165_p0 = pnand %p2164_p11, %p2158_p10 }
 0x21d   : > { %2168 = shalt.err (!%p2165_p0)
}
 0x21e   : > { %s2232_s29 = smov 64   ;;  %s2233_s18 = smov 4  }
 0x21f   : > { %1962 = dma.vmem_to_hbm [thread:$0]  (%p3222_p9), %s3161_s30, 1024, %s3159_s7, %s1808_s15, %s2232_s29, %s2232_s29, %s2233_s18  }
 0x220 PF: > { %s1839_s4 = sand.u32 1, %s2203_s12   ;;  %p3223_p6 = scmp.ne.s32.totalorder %s3219_s27, 0 }
 0x221   : > { %p3224_p13 = scmp.ge.s32.totalorder %s2223_s17, 2  ;;  %s1840_s5 = scalar_lea.sflag [#allocation4], %s1839_s4 }
 0x223   : > { %p1969_p2 = pnand %p3224_p13, %p3223_p6 }
 0x225   : > { %2198 = dma.done.wait (!%p1969_p2), %s1840_s5, 1024  }
 0x226   : > { %2200 = vsyncadd (!%p1969_p2), %s1840_s5, 4294966272  ;;  %s19_s17 = sadd.s32 1, %s2223_s17   ;;  %s3225_s12 = smov %s2207_s13 }
 0x227   : > { %p16_p5 = scmp.ge.s32.totalorder %s19_s17, 4   ;;  %s3226_s13 = smov %s2211_s14 }
 0x228   : > { %s3227_s14 = smov %s2310_s26  ;;  %s3228_s15 = smov %s2219_s16 }
 0x229   : > { %s3229_s16 = smov %s3231_s20  ;;  %18 = sbr.rel (!%p16_p5) target bundleno = 6 (0x6), region = 83 }
 0x230   :  { %1845 = vsyncpa [#allocation3], 1 }
 0x231   :  { %1847 = vsyncpa [#allocation3 + $0x1], 1 }
 0x232   :  { %1848 = vsyncpa [#allocation4], 1 }
 0x233   :  { %1850 = vsyncpa [#allocation4 + $0x1], 1 }

</bundles_post_ra>
